<compile_context>
chip_gen: v7x
topology: tpu7x:2x2x1
jax: 0.10.0
libtpu: 0.0.40
codegen_flags: <defaults>
</compile_context>

<pallas_src>
import functools

import jax
import jax.numpy as jnp
from jax.experimental import pallas as pl
from jax.experimental.pallas import tpu as pltpu


def _vmem_budget():
    """Per-generation VMEM sizing: (vmem_limit_bytes, block budget bytes)."""
    try:
        cap = int(getattr(pltpu.get_tpu_info(), "vmem_capacity_bytes"))
    except Exception:  # no TPU info available -> conservative v7x-safe default
        cap = 64 * 1024 * 1024
    limit = min((cap * 3) // 4, 100 * 1024 * 1024)   # ~48 MiB v7x, ~96 MiB v5e/v6e
    budget = (limit * 4) // 5                        # headroom for residents/scratch
    return int(limit), int(budget)


_VMEM_LIMIT_BYTES, _VMEM_BLOCK_BUDGET = _vmem_budget()


def dual_encoder_kernel(ctx_ref, rsp_ref, w_ref, b_ref, m_ref, score_ref):
    # ctx_ref / rsp_ref : (block_B, S*E)   lane-dense flattened sequence tiles
    # w_ref             : (S*E, H_pad)     resident; mean-pool folded: tile(W,(S,1))/S
    # b_ref             : (1, H_pad)       resident; f32 bias (zero-padded)
    # m_ref             : (H_pad, H_pad)   resident; bilinear matrix M (zero-padded)
    # score_ref         : (1, block_B)     lane-dense f32 scores for this block
    w = w_ref[...]                         # already compute-dtype (bf16); no per-step cast
    b = b_ref[...]                         # f32

    # encoder(x) = tanh(mean_t(x) @ W + b), pooled fold exact: x_flat @ (tile(W)/S)
    c_h = jnp.tanh(jnp.dot(ctx_ref[...], w, preferred_element_type=jnp.float32) + b)
    r_h = jnp.tanh(jnp.dot(rsp_ref[...], w, preferred_element_type=jnp.float32) + b)

    # dual-encoder scoring: (c_h @ M) row-wise dotted with r_h
    cm = jnp.dot(c_h.astype(m_ref.dtype), m_ref[...],
                 preferred_element_type=jnp.float32)          # (block_B, H_pad)
    score = jnp.sum(cm * r_h, axis=-1)                        # (block_B,)
    score_ref[...] = score[None, :].astype(score_ref.dtype)   # lane-dense store


def _auto_blocking(batch, flat_width, itemsize):
    """Pick (block_b, padded_batch).

    Small batches: one unpadded full-array step (zero padding waste).
    Large batches: >=2 lane-dense multiple-of-128 tiles (v7x has 2 TCs), sized
    so the double-buffered ctx+rsp blocks fit the per-generation VMEM budget.
    """
    per_row = 2 * 2 * flat_width * itemsize            # 2 inputs x 2 pipeline buffers
    max_rows = max(128, (int(_VMEM_BLOCK_BUDGET) // max(per_row, 1)) // 128 * 128)
    if batch <= 256:
        b_pad = pl.cdiv(batch, 8) * 8                  # sublane-align only; no 128 pad
        return int(b_pad), int(b_pad)
    block_b = min(max_rows, pl.cdiv(batch, 2 * 128) * 128)   # aim for >=2 grid steps
    block_b = max(128, int(block_b))
    b_pad = pl.cdiv(batch, block_b) * block_b
    return int(block_b), int(b_pad)


@functools.partial(jax.jit, static_argnames=("block_b",))
def dual_encoder_forward(context, response, W, bvec, M, *, block_b=None):
    B, S, E = context.shape
    H = M.shape[0]
    flat = S * E
    cdt = context.dtype          # MXU operand dtype (bf16 in the demo)

    # lane-dense flattening: (B, S, E) -> (B, S*E); contiguous row-major, free
    ctx_flat = context.reshape(B, flat)
    rsp_flat = response.reshape(B, flat)

    # fold mean-pool into the projection + zero-pad hidden dim to 128 lanes
    # (padded columns give tanh(0)=0 and zero M rows/cols -> exact zero score terms)
    H_pad = pl.cdiv(H, 128) * 128
    W_big = jnp.tile(W, (S, 1)) * (1.0 / S)                            # row s*E+e = W[e]/S
    W_big = jnp.pad(W_big, ((0, 0), (0, H_pad - H))).astype(cdt)       # (S*E, H_pad)
    b_pad = jnp.pad(bvec.astype(jnp.float32), (0, H_pad - H)).reshape(1, H_pad)
    M_pad = jnp.pad(M, ((0, H_pad - H), (0, H_pad - H))).astype(cdt)   # (H_pad, H_pad)

    if block_b is None:
        block_b, B_pad = _auto_blocking(B, flat, jnp.dtype(cdt).itemsize)
    else:
        B_pad = pl.cdiv(B, block_b) * block_b
    if B_pad != B:
        pad = ((0, B_pad - B), (0, 0))
        ctx_flat = jnp.pad(ctx_flat, pad)
        rsp_flat = jnp.pad(rsp_flat, pad)
    grid = (B_pad // block_b,)

    # TODO(synk): for very large S*E (flat block exceeding the VMEM budget), add a
    # second 'arbitrary' grid axis over flat-width chunks accumulating the pre-tanh
    # projection into VMEM scratch (P3 pattern).
    scores_row = pl.pallas_call(
        dual_encoder_kernel,
        out_shape=jax.ShapeDtypeStruct((1, B_pad), jnp.float32),
        grid_spec=pltpu.PrefetchScalarGridSpec(
            num_scalar_prefetch=0,
            grid=grid,
            in_specs=[
                pl.BlockSpec((block_b, flat), lambda i: (i, 0)),   # context tiles
                pl.BlockSpec((block_b, flat), lambda i: (i, 0)),   # response tiles
                pl.BlockSpec((flat, H_pad), lambda i: (0, 0)),     # W_big  (resident)
                pl.BlockSpec((1, H_pad), lambda i: (0, 0)),        # bias   (resident)
                pl.BlockSpec((H_pad, H_pad), lambda i: (0, 0)),    # M      (resident)
            ],
            out_specs=pl.BlockSpec((1, block_b), lambda i: (0, i)),
        ),
        compiler_params=pltpu.CompilerParams(
            dimension_semantics=("parallel",),        # batch axis; v7x shards over 2 TCs
            vmem_limit_bytes=_VMEM_LIMIT_BYTES,       # generation-aware limit
        ),
    )(ctx_flat, rsp_flat, W_big, b_pad, M_pad)

    # (1, B_pad) lane-dense slab -> (B, 1); pure layout plumbing in the wrapper
    return scores_row.reshape(B_pad, 1)[:B]


def dual_encoder_ref(context, response, W, bvec, M):
    """Pure-JAX f32 reference matching the PyTorch forward."""
    def encode(x):
        pooled = jnp.mean(x.astype(jnp.float32), axis=1)
        return jnp.tanh(pooled @ W.astype(jnp.float32) + bvec.astype(jnp.float32))
    c_h = encode(context)
    r_h = encode(response)
    cm = c_h @ M.astype(jnp.float32)
    return jnp.sum(cm * r_h, axis=-1, keepdims=True)


if __name__ == "__main__":
    # small demo shapes: hidden_size = 32, bf16 sequence inputs
    B, S, E, H = 200, 8, 32, 32

    key = jax.random.PRNGKey(0)
    k_ctx, k_rsp, k_w, k_m = jax.random.split(key, 4)

    context = jax.random.normal(k_ctx, (B, S, E), dtype=jnp.float32).astype(jnp.bfloat16)
    response = jax.random.normal(k_rsp, (B, S, E), dtype=jnp.float32).astype(jnp.bfloat16)

    # encoder parameters (deterministic init)
    W = jax.random.normal(k_w, (E, H), dtype=jnp.float32) * (1.0 / jnp.sqrt(E))
    bvec = jnp.zeros((H,), dtype=jnp.float32)
    # M: xavier_normal -> std = sqrt(2 / (fan_in + fan_out))
    M = jax.random.normal(k_m, (H, H), dtype=jnp.float32) * jnp.sqrt(2.0 / (H + H))

    ref = dual_encoder_ref(context, response, W, bvec, M)

    # bf16 MXU operands (f32 accumulate) vs the f32 reference -> ~1e-2 scale
    # differences are expected; 2e-2 tolerance covers that comfortably.
    TOL = 2e-2

    # auto blocking: B=200 -> one unpadded full-array step (tight-padding path)
    score = jax.block_until_ready(dual_encoder_forward(context, response, W, bvec, M))
    assert score.shape == (B, 1)
    assert jnp.allclose(score, ref, atol=TOL, rtol=TOL), (score, ref)

    # forced block_b=128 exercises the multi-step pipelined grid (200 -> 256, grid=(2,))
    score2 = jax.block_until_ready(
        dual_encoder_forward(context, response, W, bvec, M, block_b=128))
    assert score2.shape == (B, 1)
    assert jnp.allclose(score2, ref, atol=TOL, rtol=TOL), (score2, ref)

    print("KERNEL_OK")
</pallas_src>

<mosaic_0001>
module attributes {stable_mosaic.version = 11 : i64} {
  func.func @dual_encoder_kernel(%arg0: i32, %arg1: memref<200x256xbf16, #tpu.memory_space<vmem>>, %arg2: memref<200x256xbf16, #tpu.memory_space<vmem>>, %arg3: memref<256x128xbf16, #tpu.memory_space<vmem>>, %arg4: memref<1x128xf32, #tpu.memory_space<vmem>>, %arg5: memref<128x128xbf16, #tpu.memory_space<vmem>>, %arg6: memref<1x200xf32, #tpu.memory_space<vmem>>) attributes {dimension_semantics = [#tpu.dimension_semantics<parallel>], iteration_bounds = array<i64: 1>, scalar_prefetch = 0 : i64, scratch_operands = 0 : i64, tpu.core_type = #tpu.core_type<tc>, window_params = [{transform_indices = @transform_0, window_bounds = array<i64: 200, 256>}, {transform_indices = @transform_1, window_bounds = array<i64: 200, 256>}, {pipeline_mode = #tpu.pipeline_mode<synchronous>, transform_indices = @transform_2, window_bounds = array<i64: 256, 128>}, {pipeline_mode = #tpu.pipeline_mode<synchronous>, transform_indices = @transform_3, window_bounds = array<i64: 1, 128>}, {pipeline_mode = #tpu.pipeline_mode<synchronous>, transform_indices = @transform_4, window_bounds = array<i64: 128, 128>}, {transform_indices = @transform_5, window_bounds = array<i64: 1, 200>}]} {
    %c0 = arith.constant 0 : index
    %c0_0 = arith.constant 0 : index
    %0 = vector.load %arg3[%c0, %c0_0] : memref<256x128xbf16, #tpu.memory_space<vmem>>, vector<256x128xbf16>
    %c0_1 = arith.constant 0 : index
    %c0_2 = arith.constant 0 : index
    %1 = vector.load %arg4[%c0_1, %c0_2] : memref<1x128xf32, #tpu.memory_space<vmem>>, vector<1x128xf32>
    %c0_3 = arith.constant 0 : index
    %c0_4 = arith.constant 0 : index
    %2 = vector.load %arg1[%c0_3, %c0_4] : memref<200x256xbf16, #tpu.memory_space<vmem>>, vector<200x256xbf16>
    %cst = arith.constant dense<0.000000e+00> : vector<200x128xf32>
    %3 = tpu.matmul %2, %0, %cst {dimension_numbers = #tpu.dot_dimension_numbers<[1], [0], [0], [1], [0, 0, 1, 1], [], []>} : vector<200x256xbf16>, vector<256x128xbf16>, vector<200x128xf32> -> vector<200x128xf32>
    %4 = vector.broadcast %1 : vector<1x128xf32> to vector<200x128xf32>
    %5 = arith.addf %3, %4 : vector<200x128xf32>
    %6 = math.tanh %5 : vector<200x128xf32>
    %c0_5 = arith.constant 0 : index
    %c0_6 = arith.constant 0 : index
    %7 = vector.load %arg2[%c0_5, %c0_6] : memref<200x256xbf16, #tpu.memory_space<vmem>>, vector<200x256xbf16>
    %cst_7 = arith.constant dense<0.000000e+00> : vector<200x128xf32>
    %8 = tpu.matmul %7, %0, %cst_7 {dimension_numbers = #tpu.dot_dimension_numbers<[1], [0], [0], [1], [0, 0, 1, 1], [], []>} : vector<200x256xbf16>, vector<256x128xbf16>, vector<200x128xf32> -> vector<200x128xf32>
    %9 = vector.broadcast %1 : vector<1x128xf32> to vector<200x128xf32>
    %10 = arith.addf %8, %9 : vector<200x128xf32>
    %11 = math.tanh %10 : vector<200x128xf32>
    %12 = arith.truncf %6 : vector<200x128xf32> to vector<200x128xbf16>
    %c0_8 = arith.constant 0 : index
    %c0_9 = arith.constant 0 : index
    %13 = vector.load %arg5[%c0_8, %c0_9] : memref<128x128xbf16, #tpu.memory_space<vmem>>, vector<128x128xbf16>
    %cst_10 = arith.constant dense<0.000000e+00> : vector<200x128xf32>
    %14 = tpu.matmul %12, %13, %cst_10 {dimension_numbers = #tpu.dot_dimension_numbers<[1], [0], [0], [1], [0, 0, 1, 1], [], []>} : vector<200x128xbf16>, vector<128x128xbf16>, vector<200x128xf32> -> vector<200x128xf32>
    %15 = arith.mulf %14, %11 : vector<200x128xf32>
    %cst_11 = arith.constant dense<0.000000e+00> : vector<200xf32>
    %16 = vector.multi_reduction <add>, %15, %cst_11 [1] : vector<200x128xf32> to vector<200xf32>
    %17 = vector.shape_cast %16 : vector<200xf32> to vector<1x200xf32>
    %c0_12 = arith.constant 0 : index
    %c0_13 = arith.constant 0 : index
    %18 = vector.load %arg6[%c0_12, %c0_13] : memref<1x200xf32, #tpu.memory_space<vmem>>, vector<1x200xf32>
    tpu.vector_store %arg6[%c0_12, %c0_13], %17 {strides = array<i32>} : memref<1x200xf32, #tpu.memory_space<vmem>>, vector<1x200xf32>,
    return
  }
  func.func @transform_0(%arg0: i32) -> (i32, i32) {
    %c0_i32 = arith.constant 0 : i32
    %c0_i32_0 = arith.constant 0 : i32
    return %arg0, %c0_i32 : i32, i32
  }
  func.func @transform_1(%arg0: i32) -> (i32, i32) {
    %c0_i32 = arith.constant 0 : i32
    %c0_i32_0 = arith.constant 0 : i32
    return %arg0, %c0_i32 : i32, i32
  }
  func.func @transform_2(%arg0: i32) -> (i32, i32) {
    %c0_i32 = arith.constant 0 : i32
    %c0_i32_0 = arith.constant 0 : i32
    %c0_i32_1 = arith.constant 0 : i32
    return %c0_i32, %c0_i32_0 : i32, i32
  }
  func.func @transform_3(%arg0: i32) -> (i32, i32) {
    %c0_i32 = arith.constant 0 : i32
    %c0_i32_0 = arith.constant 0 : i32
    %c0_i32_1 = arith.constant 0 : i32
    return %c0_i32, %c0_i32_0 : i32, i32
  }
  func.func @transform_4(%arg0: i32) -> (i32, i32) {
    %c0_i32 = arith.constant 0 : i32
    %c0_i32_0 = arith.constant 0 : i32
    %c0_i32_1 = arith.constant 0 : i32
    return %c0_i32, %c0_i32_0 : i32, i32
  }
  func.func @transform_5(%arg0: i32) -> (i32, i32) {
    %c0_i32 = arith.constant 0 : i32
    %c0_i32_0 = arith.constant 0 : i32
    return %c0_i32, %arg0 : i32, i32
  }
}

</mosaic_0001>

<bundles_post_ra>
// kernel: dual_encoder_forward.1
= control target key start
LH: loop header
LB: loop body
LE: loop exit
PB: predicated region body
PF: predicated region fallthrough
CT: control target
= control target key end

     0   :  { %v3987_v22 = vmov 0.0   ;;  %s5103_s0 = inlined_call_operand.vmem [shape: bf16[200,256], index: 0, kind: input, shape index: {}]   ;;  %s5104_s1 = inlined_call_operand.vmem [shape: bf16[200,256], index: 1, kind: input, shape index: {}]   ;;  %s5105_s2 = inlined_call_operand.vmem [shape: bf16[256,128], index: 2, kind: input, shape index: {}]   ;;  %s5106_s3 = inlined_call_operand.vmem [shape: f32[1,128], index: 3, kind: input, shape index: {}]   ;;  %s5107_s4 = inlined_call_operand.vmem [shape: bf16[128,128], index: 4, kind: input, shape index: {}]   ;;  %s5108_s5 = inlined_call_operand.hbm [shape: f32[1,200], index: 5, kind: output, shape index: {}]  }
   0x1   :  { %v3763_v0 = vld [vmem:[%s5105_s2 + $0x40] sm:$0xff]   ;;  %v4033_v2 = vld [vmem:[%s5105_s2 + $0x48] sm:$0xff]   ;;  %v4046_v4 = vld [vmem:[%s5105_s2 + $0x50] sm:$0xff]  }
   0x2   :  { %v4028_v1 = vld [vmem:[%s5105_s2] sm:$0xff]   ;;  %3463 = vmatprep.subr.bf16.mxu0 %v3763_v0  ;;  %3740 = vmatprep.subr.bf16.mxu1 %v3763_v0  ;;  %v4039_v3 = vld [vmem:[%s5105_s2 + $0x8] sm:$0xff]   ;;  %v4053_v5 = vld [vmem:[%s5105_s2 + $0x10] sm:$0xff]  }
   0x3   :  { %3464 = vmatpush3.bf16.msra.mxu0 %v4028_v1  ;;  %3748 = vmatpush3.bf16.msra.mxu1 %v4028_v1  ;;  %v4060_v6 = vld [vmem:[%s5105_s2 + $0x58] sm:$0xff]   ;;  %v4074_v8 = vld [vmem:[%s5105_s2 + $0x60] sm:$0xff]   ;;  %v4088_v10 = vld [vmem:[%s5105_s2 + $0x68] sm:$0xff]  }
   0x4   :  { %3465 = vmatprep.subr.bf16.mxu0 %v4033_v2  ;;  %3741 = vmatprep.subr.bf16.mxu1 %v4033_v2  ;;  %v4067_v7 = vld [vmem:[%s5105_s2 + $0x18] sm:$0xff]   ;;  %v4081_v9 = vld [vmem:[%s5105_s2 + $0x20] sm:$0xff]   ;;  %v4098_v12 = vld [vmem:[%s5105_s2 + $0x28] sm:$0xff]  }
   0x5   :  { %v3781_v11 = vld [vmem:[%s5103_s0 + $0x4] ss:$8 sps:$4 sm:$0xff]   ;;  %v4104_v13 = vld [vmem:[%s5105_s2 + $0x70] sm:$0xff]   ;;  %v4118_v15 = vld [vmem:[%s5105_s2 + $0x78] sm:$0xff]  }
   0x6   :  { %341 = vmatprep.mubr.bf16.mxu0 %v3781_v11  ;;  %v4112_v14 = vld [vmem:[%s5105_s2 + $0x30] sm:$0xff]   ;;  %v4129_v17 = vld [vmem:[%s5105_s2 + $0x38] sm:$0xff]   ;;  %v3779_v18 = vld [vmem:[%s5103_s0] ss:$8 sps:$4 sm:$0xff]  }
   0x7   :  { %3466 = vmatpush3.bf16.msra.mxu0 %v4039_v3  ;;  %3749 = vmatpush3.bf16.msra.mxu1 %v4039_v3  ;;  %v3802_v16 = vld [vmem:[%s5103_s0 + $0x74] ss:$8 sps:$4 sm:$0xff]   ;;  %v3800_v20 = vld [vmem:[%s5103_s0 + $0x70] ss:$8 sps:$4 sm:$0xff]   ;;  %v3803_v21 = vld [vmem:[%s5103_s0 + $0x84] ss:$8 sps:$4 sm:$0xff]  }
   0x8   :  { %3467 = vmatprep.subr.bf16.mxu0 %v4046_v4  ;;  %3742 = vmatprep.subr.bf16.mxu1 %v4046_v4  ;;  %v3782_v19 = vld [vmem:[%s5103_s0 + $0x14] ss:$8 sps:$4 sm:$0xff]   ;;  %v3817_v23 = vld [vmem:[%s5107_s4] sm:$0xff]   ;;  %v3784_v24 = vld [vmem:[%s5103_s0 + $0x10] ss:$8 sps:$4 sm:$0xff]  }
   0x9   :  { %397 = vmatprep.mubr.bf16.mxu1 %v3802_v16  ;;  %v3785_v25 = vld [vmem:[%s5103_s0 + $0x24] ss:$8 sps:$4 sm:$0xff]   ;;  %v3805_v26 = vld [vmem:[%s5103_s0 + $0x80] ss:$8 sps:$4 sm:$0xff]   ;;  %v3806_v28 = vld [vmem:[%s5103_s0 + $0x94] ss:$8 sps:$4 sm:$0xff]  }
   0xa   :  { %v3818_v27 = vld [vmem:[%s5107_s4 + $0x8] sm:$0xff]   ;;  %v3819_v29 = vld [vmem:[%s5107_s4 + $0x10] sm:$0xff]   ;;  %v3820_v30 = vld [vmem:[%s5107_s4 + $0x18] sm:$0xff]  }
   0xb   :  { %3468 = vmatpush3.bf16.msra.mxu0 %v4053_v5  ;;  %3750 = vmatpush3.bf16.msra.mxu1 %v4053_v5  ;;  %v3787_v31 = vld [vmem:[%s5103_s0 + $0x20] ss:$8 sps:$4 sm:$0xff]   ;;  %v3788_v32 = vld [vmem:[%s5103_s0 + $0x34] ss:$8 sps:$4 sm:$0xff]   ;;  %v3808_v33 = vld [vmem:[%s5103_s0 + $0x90] ss:$8 sps:$4 sm:$0xff]  }
   0xc   :  { %3469 = vmatprep.subr.bf16.mxu0 %v4060_v6  ;;  %3743 = vmatprep.subr.bf16.mxu1 %v4060_v6 }
   0xf   :  { %3470 = vmatpush3.bf16.msra.mxu0 %v4067_v7  ;;  %3751 = vmatpush3.bf16.msra.mxu1 %v4067_v7 }
  0x10   :  { %3471 = vmatprep.subr.bf16.mxu0 %v4074_v8  ;;  %3744 = vmatprep.subr.bf16.mxu1 %v4074_v8 }
  0x13   :  { %3472 = vmatpush3.bf16.msra.mxu0 %v4081_v9  ;;  %3752 = vmatpush3.bf16.msra.mxu1 %v4081_v9 }
  0x14   :  { %3473 = vmatprep.subr.bf16.mxu0 %v4088_v10  ;;  %3745 = vmatprep.subr.bf16.mxu1 %v4088_v10 }
  0x17   :  { %3474 = vmatpush3.bf16.msra.mxu0 %v4098_v12  ;;  %3753 = vmatpush3.bf16.msra.mxu1 %v4098_v12 }
  0x18   :  { %3475 = vmatprep.subr.bf16.mxu0 %v4104_v13  ;;  %3746 = vmatprep.subr.bf16.mxu1 %v4104_v13 }
  0x1b   :  { %3476 = vmatpush3.bf16.msra.mxu0 %v4112_v14  ;;  %3754 = vmatpush3.bf16.msra.mxu1 %v4112_v14 }
  0x1c   :  { %3477 = vmatprep.subr.bf16.mxu0 %v4118_v15  ;;  %3747 = vmatprep.subr.bf16.mxu1 %v4118_v15 }
  0x1f   :  { %3478 = vmatpush3.bf16.msra.mxu0 %v4129_v17  ;;  %3755 = vmatpush3.bf16.msra.mxu1 %v4129_v17 }
  0x20   :  { %3672 = vmatprep.subr.bf16.mxu0 %v3987_v22  ;;  %3557 = vmatprep.subr.bf16.mxu1 %v3763_v0 }
  0x22   :  { %342 = vmatmul.mubr.bf16.vlgmr.msra.gmra.mrb[0].mxu0 %v3779_v18  ;;  %398 = vmatmul.mubr.bf16.vlgmr.msra.gmra.mrb[0].mxu1 %v3800_v20 }
  0x23   :  { %349 = vmatprep.mubr.bf16.mxu0 %v3782_v19  ;;  %405 = vmatprep.mubr.bf16.mxu1 %v3803_v21 }
  0x24   :  { %3558 = vmatpush3.bf16.msra.mxu1 %v4028_v1  ;;  %3673 = vmatpush3.bf16.msra.mxu0 %v3817_v23 }
  0x25   :  { %3559 = vmatprep.subr.bf16.mxu1 %v4033_v2  ;;  %3674 = vmatprep.subr.bf16.mxu0 %v3987_v22 }
  0x28   :  { %3560 = vmatpush3.bf16.msra.mxu1 %v4039_v3  ;;  %3675 = vmatpush3.bf16.msra.mxu0 %v3818_v27 }
  0x29   :  { %3561 = vmatprep.subr.bf16.mxu1 %v4046_v4  ;;  %3676 = vmatprep.subr.bf16.mxu0 %v3987_v22 }
  0x2a   :  { %350 = vmatmul.mubr.bf16.gmra.mrb[4].mxu0 %v3784_v24  ;;  %406 = vmatmul.mubr.bf16.gmra.mrb[4].mxu1 %v3805_v26 }
  0x2b   :  { %357 = vmatprep.mubr.bf16.mxu0 %v3785_v25  ;;  %413 = vmatprep.mubr.bf16.mxu1 %v3806_v28 }
  0x2c   :  { %3562 = vmatpush3.bf16.msra.mxu1 %v4053_v5  ;;  %3677 = vmatpush3.bf16.msra.mxu0 %v3819_v29 }
  0x2d   :  { %3563 = vmatprep.subr.bf16.mxu1 %v4060_v6  ;;  %3678 = vmatprep.subr.bf16.mxu0 %v3987_v22 }
  0x2e   :  { %10 = vsyncpa [#allocation3], 0  ;;  %v3809_v34 = vld [vmem:[%s5103_s0 + $0xa4] ss:$8 sps:$4 sm:$0xff]   ;;  %v3790_v36 = vld [vmem:[%s5103_s0 + $0x30] ss:$8 sps:$4 sm:$0xff]  }
  0x2f   :  { %v3821_v35 = vld [vmem:[%s5107_s4 + $0x20] sm:$0xff]   ;;  %v3812_v39 = vld [vmem:[%s5103_s0 + $0xb4] ss:$8 sps:$4 sm:$0xff]   ;;  %v3814_v43 = vld [vmem:[%s5103_s0 + $0xb0] ss:$8 sps:$4 sm:$0xff]   ;;  %vm3988_vm0 = vmmov 0  }
  0x30   :  { %3564 = vmatpush3.bf16.msra.mxu1 %v4067_v7  ;;  %3679 = vmatpush3.bf16.msra.mxu0 %v3820_v30  ;;  %v3791_v37 = vld [vmem:[%s5103_s0 + $0x44] ss:$8 sps:$4 sm:$0xff]   ;;  %v3811_v38 = vld [vmem:[%s5103_s0 + $0xa0] ss:$8 sps:$4 sm:$0xff]   ;;  %v3794_v42 = vld [vmem:[%s5103_s0 + $0x54] ss:$8 sps:$4 sm:$0xff]  }
  0x31   :  { %3565 = vmatprep.subr.bf16.mxu1 %v4074_v8  ;;  %3680 = vmatprep.subr.bf16.mxu0 %v3987_v22  ;;  %v79_v40 = vld [vmem:[%s5103_s0 + $0xc0] sm:$0xff]  ;;  %v3796_v45 = vld [vmem:[%s5103_s0 + $0x50] ss:$8 sps:$4 sm:$0xff]   ;;  %v3822_v50 = vld [vmem:[%s5107_s4 + $0x28] sm:$0xff]   ;;  %vm3207_vm1 = vcmask 130112   ;;  %vm3214_vm2 = vcmask 195712  }
  0x32   :  { %358 = vmatmul.mubr.bf16.gmra.mrb[8].mxu0 %v3787_v31  ;;  %414 = vmatmul.mubr.bf16.gmra.mrb[8].mxu1 %v3808_v33  ;;  %v3793_v41 = vld [vmem:[%s5103_s0 + $0x40] ss:$8 sps:$4 sm:$0xff]   ;;  %v3412_v44 = vcombine.high %v79_v40, %v79_v40  ;;  %v3797_v46 = vld [vmem:[%s5103_s0 + $0x64] ss:$8 sps:$4 sm:$0xff]   ;;  %v3411_v47 = vcombine.low %v79_v40, %v79_v40  ;;  %v3827_v52 = vld [vmem:[%s5104_s1 + $0x14] ss:$8 sps:$4 sm:$0xff]  }
  0x33   :  { %365 = vmatprep.mubr.bf16.mxu0 %v3788_v32  ;;  %421 = vmatprep.mubr.bf16.mxu1 %v3809_v34  ;;  %v3799_v48 = vld [vmem:[%s5103_s0 + $0x60] ss:$8 sps:$4 sm:$0xff]   ;;  %v3825_v49 = vld [vmem:[%s5104_s1 + $0x4] ss:$8 sps:$4 sm:$0xff]   ;;  %v3826_v53 = vld [vmem:[%s5107_s4 + $0x30] sm:$0xff]   ;;  %vm3221_vm3 = vcmask 261312  }
  0x34   :  { %3566 = vmatpush3.bf16.msra.mxu1 %v4081_v9  ;;  %3681 = vmatpush3.bf16.msra.mxu0 %v3821_v35  ;;  %v3823_v51 = vld [vmem:[%s5104_s1] ss:$8 sps:$4 sm:$0xff]   ;;  %v3829_v54 = vld [vmem:[%s5104_s1 + $0x10] ss:$8 sps:$4 sm:$0xff]   ;;  %v3831_v55 = vld [vmem:[%s5104_s1 + $0x24] ss:$8 sps:$4 sm:$0xff]  }
  0x35   :  { %3567 = vmatprep.subr.bf16.mxu1 %v4088_v10  ;;  %3682 = vmatprep.subr.bf16.mxu0 %v3987_v22  ;;  %v3830_v56 = vld [vmem:[%s5107_s4 + $0x38] sm:$0xff]   ;;  %v3833_v57 = vld [vmem:[%s5104_s1 + $0x20] ss:$8 sps:$4 sm:$0xff]   ;;  %v3837_v60 = vld [vmem:[%s5104_s1 + $0x44] ss:$8 sps:$4 sm:$0xff]   ;;  %vm3228_vm4 = vcmask 326912  }
  0x36   :  { %v3834_v58 = vld [vmem:[%s5104_s1 + $0x34] ss:$8 sps:$4 sm:$0xff]   ;;  %v3836_v59 = vld [vmem:[%s5104_s1 + $0x30] ss:$8 sps:$4 sm:$0xff]   ;;  %v3839_v61 = vld [vmem:[%s5104_s1 + $0x40] ss:$8 sps:$4 sm:$0xff]  }
  0x37   :  { %v3840_v62 = vld [vmem:[%s5104_s1 + $0x54] ss:$8 sps:$4 sm:$0xff]   ;;  %v3842_v63 = vld [vmem:[%s5104_s1 + $0x50] ss:$8 sps:$4 sm:$0xff]   ;;  %v3843_v0 = vld [vmem:[%s5104_s1 + $0x64] ss:$8 sps:$4 sm:$0xff]  }
  0x38   :  { %3568 = vmatpush3.bf16.msra.mxu1 %v4098_v12  ;;  %3683 = vmatpush3.bf16.msra.mxu0 %v3822_v50  ;;  %v3845_v1 = vld [vmem:[%s5104_s1 + $0x60] ss:$8 sps:$4 sm:$0xff]   ;;  %v3846_v2 = vld [vmem:[%s5104_s1 + $0x74] ss:$8 sps:$4 sm:$0xff]   ;;  %v3848_v3 = vld [vmem:[%s5104_s1 + $0x70] ss:$8 sps:$4 sm:$0xff]  }
  0x39   :  { %3569 = vmatprep.subr.bf16.mxu1 %v4104_v13  ;;  %3684 = vmatprep.subr.bf16.mxu0 %v3987_v22  ;;  %v3849_v4 = vld [vmem:[%s5104_s1 + $0x84] ss:$8 sps:$4 sm:$0xff]   ;;  %v3851_v5 = vld [vmem:[%s5104_s1 + $0x80] ss:$8 sps:$4 sm:$0xff]   ;;  %v3852_v6 = vld [vmem:[%s5104_s1 + $0x94] ss:$8 sps:$4 sm:$0xff]  }
  0x3a   :  { %366 = vmatmul.mubr.bf16.gmra.mrb[12].mxu0 %v3790_v36  ;;  %422 = vmatmul.mubr.bf16.gmra.mrb[12].mxu1 %v3811_v38  ;;  %v3854_v7 = vld [vmem:[%s5104_s1 + $0x90] ss:$8 sps:$4 sm:$0xff]   ;;  %v3855_v8 = vld [vmem:[%s5104_s1 + $0xa4] ss:$8 sps:$4 sm:$0xff]   ;;  %v3857_v9 = vld [vmem:[%s5104_s1 + $0xa0] ss:$8 sps:$4 sm:$0xff]  }
  0x3b   :  { %373 = vmatprep.mubr.bf16.mxu0 %v3791_v37  ;;  %429 = vmatprep.mubr.bf16.mxu1 %v3812_v39  ;;  %v3858_v10 = vld [vmem:[%s5104_s1 + $0xb4] ss:$8 sps:$4 sm:$0xff]   ;;  %v3860_v11 = vld [vmem:[%s5104_s1 + $0xb0] ss:$8 sps:$4 sm:$0xff]   ;;  %v494_v12 = vld [vmem:[%s5104_s1 + $0xc0] sm:$0xff]  ;;  %vm3235_vm5 = vcmask 392512  }
  0x3c   :  { %3570 = vmatpush3.bf16.msra.mxu1 %v4112_v14  ;;  %3685 = vmatpush3.bf16.msra.mxu0 %v3826_v53  ;;  %v3454_v13 = vcombine.high %v494_v12, %v494_v12  ;;  %v3453_v14 = vcombine.low %v494_v12, %v494_v12  ;;  %v4332_v16 = vld [vmem:[%s5106_s3] ss:$0 sm:$0xff]  ;;  %vm3242_vm6 = vcmask 458112   ;;  %vm3249_vm7 = vcmask 523712   ;;  %s3991_s1 = smov [#allocation2]  }
  0x3d   :  { %3571 = vmatprep.subr.bf16.mxu1 %v4118_v15  ;;  %3686 = vmatprep.subr.bf16.mxu0 %v3987_v22  ;;  %vm3256_vm8 = vcmask 589312   ;;  %vm3263_vm9 = vcmask 654912   ;;  %vm3270_vm10 = vcmask 720512   ;;  %vm3277_vm11 = vcmask 786112   ;;  %s3378_s3 = sshll.u32 %s3991_s1, 4  ;;  %s3379_s3 = int_to_ptr.vmem [resolvable:$true] %s3378_s3 }
  0x3e   :  { %vm3284_vm12 = vcmask 851712   ;;  %vm3291_vm13 = vcmask 917312   ;;  %vm3298_vm14 = vcmask 982912   ;;  %vm3305_vm15 = vcmask 1048512   ;;  %s3963_s9 = scalar_lea.vmem %s3379_s3, 32  ;;  %p3968_p1 = scmp.lt.s32.totalorder %s3379_s3, %s3379_s3 }
  0x3f   :  { %p3964_p0 = scmp.ne.s32.totalorder %s3379_s3, %s3963_s9  ;;  %p3969_p2 = scmp.lt.s32.totalorder %s3963_s9, %s3963_s9 }
  0x40   :  { %3572 = vmatpush3.bf16.msra.mxu1 %v4129_v17  ;;  %3687 = vmatpush3.bf16.msra.mxu0 %v3830_v56 }
  0x41   :  { %p3970_p3 = por %p3969_p2, %p3968_p1 }
  0x42   :  { %374 = vmatmul.mubr.bf16.gmra.mrb[16].mxu0 %v3793_v41  ;;  %430 = vmatmul.mubr.bf16.gmra.mrb[16].mxu1 %v3814_v43 }
  0x43   :  { %381 = vmatprep.mubr.bf16.mxu0 %v3794_v42  ;;  %437 = vmatprep.mubr.bf16.mxu1 %v3412_v44  ;;  %p3971_p4 = pnand %p3970_p3, %p3964_p0 }
  0x4a   :  { %382 = vmatmul.mubr.bf16.gmra.mrb[20].mxu0 %v3796_v45  ;;  %438 = vmatmul.mubr.bf16.gmra.mrb[20].mxu1 %v3411_v47 }
  0x4b   :  { %389 = vmatprep.mubr.bf16.mxu0 %v3797_v46  ;;  %654 = vmatprep.mubr.bf16.mxu1 %v3825_v49 }
  0x52   :  { %390 = vmatmul.mubr.bf16.gmra.mrb[24].mxu0 %v3799_v48  ;;  %655 = vmatmul.mubr.bf16.vlgmr.msra.gmra.mrb[24].mxu1 %v3823_v51 }
  0x53   :  { %662 = vmatprep.mubr.bf16.mxu1 %v3827_v52  ;;  %3688 = vmatprep.mubr.msk.bf16.mxu0 %vm3988_vm0, %v3987_v22 }
  0x5a   :  { %663 = vmatmul.mubr.bf16.gmra.mrb[28].mxu1 %v3829_v54 }
  0x5b   :  { %670 = vmatprep.mubr.bf16.mxu1 %v3831_v55 }
  0x62   :  { %671 = vmatmul.mubr.bf16.gmra.mrb[32].mxu1 %v3833_v57 }
  0x63   :  { %678 = vmatprep.mubr.bf16.mxu1 %v3834_v58 }
  0x6a   :  { %679 = vmatmul.mubr.bf16.gmra.mrb[36].mxu1 %v3836_v59 }
  0x6b   :  { %686 = vmatprep.mubr.bf16.mxu1 %v3837_v60 }
  0x72   :  { %687 = vmatmul.mubr.bf16.gmra.mrb[40].mxu1 %v3839_v61 }
  0x73   :  { %694 = vmatprep.mubr.bf16.mxu1 %v3840_v62 }
  0x7a   :  { %695 = vmatmul.mubr.bf16.gmra.mrb[44].mxu1 %v3842_v63 }
  0x7b   :  { %702 = vmatprep.mubr.bf16.mxu1 %v3843_v0 }
  0x82   :  { %703 = vmatmul.mubr.bf16.gmra.mrb[48].mxu1 %v3845_v1 }
  0x83   :  { %710 = vmatprep.mubr.bf16.mxu1 %v3846_v2 }
  0x8a   :  { %711 = vmatmul.mubr.bf16.gmra.mrb[52].mxu1 %v3848_v3 }
  0x8b   :  { %718 = vmatprep.mubr.bf16.mxu1 %v3849_v4 }
  0x92   :  { %719 = vmatmul.mubr.bf16.gmra.mrb[56].mxu1 %v3851_v5 }
  0x93   :  { %726 = vmatprep.mubr.bf16.mxu1 %v3852_v6 }
  0x9a   :  { %727 = vmatmul.mubr.bf16.gmra.mrb[60].mxu1 %v3854_v7 }
  0x9b   :  { %734 = vmatprep.mubr.bf16.mxu1 %v3855_v8 }
  0xa2   :  { %735 = vmatmul.mubr.bf16.gmra.mrb[64].mxu1 %v3857_v9 }
  0xa3   :  { %742 = vmatprep.mubr.bf16.mxu1 %v3858_v10 }
  0xaa   :  { %743 = vmatmul.mubr.bf16.gmra.mrb[68].mxu1 %v3860_v11 }
  0xab   :  { %750 = vmatprep.mubr.bf16.mxu1 %v3454_v13 }
  0xb2   :  { %751 = vmatmul.mubr.bf16.gmra.mrb[72].mxu1 %v3453_v14 }
  0xf5   :  { %v3479_v15 = vpop.f32.mrb[0].mxu0  ;;  %v3521_v18 = vpop.f32.mrb[0].mxu1 }
  0xf6   :  { %v3480_v17 = vpop.f32.mrb[1].mxu0  ;;  %v3522_v21 = vpop.f32.mrb[1].mxu1 }
  0xf7   :  { %v3481_v19 = vadd.f32 %v3480_v17, %v3479_v15  ;;  %v3482_v20 = vpop.f32.mrb[2].mxu0  ;;  %v3523_v24 = vadd.f32 %v3522_v21, %v3521_v18  ;;  %v3524_v25 = vpop.f32.mrb[2].mxu1 }
  0xf8   :  { %v3483_v23 = vpop.f32.mrb[3].mxu0  ;;  %v3525_v28 = vpop.f32.mrb[3].mxu1 }
  0xf9   :  { %v344_v26 = vadd.f32 %v3481_v19, %v4332_v16  ;;  %v3484_v27 = vadd.f32 %v3483_v23, %v3482_v20  ;;  %v400_v29 = vadd.f32 %v3523_v24, %v4332_v16  ;;  %v3526_v30 = vadd.f32 %v3525_v28, %v3524_v25 }
  0xfb   :  { %3863 = vtanh.f32 %v344_v26  ;;  %v347_v31 = vadd.f32 %v3484_v27, %v4332_v16  ;;  %v403_v32 = vadd.f32 %v3526_v30, %v4332_v16 }
  0xfc   :  { %3865 = vtanh.f32 %v400_v29 }
  0xfd   :  { %3867 = vtanh.f32 %v347_v31  ;;  %v3485_v33 = vpop.f32.mrb[4].mxu0  ;;  %v3527_v35 = vpop.f32.mrb[4].mxu1 }
  0xfe   :  { %v3486_v34 = vpop.f32.mrb[5].mxu0  ;;  %3869 = vtanh.f32 %v403_v32  ;;  %v3528_v38 = vpop.f32.mrb[5].mxu1 }
  0xff   :  { %v3487_v36 = vadd.f32 %v3486_v34, %v3485_v33  ;;  %v3488_v37 = vpop.f32.mrb[6].mxu0  ;;  %v3529_v40 = vadd.f32 %v3528_v38, %v3527_v35  ;;  %v3530_v41 = vpop.f32.mrb[6].mxu1 }
 0x100   :  { %v3489_v39 = vpop.f32.mrb[7].mxu0  ;;  %v3531_v44 = vpop.f32.mrb[7].mxu1 }
 0x101   :  { %v352_v42 = vadd.f32 %v3487_v36, %v4332_v16  ;;  %v3490_v43 = vadd.f32 %v3489_v39, %v3488_v37  ;;  %v408_v45 = vadd.f32 %v3529_v40, %v4332_v16  ;;  %v3532_v46 = vadd.f32 %v3531_v44, %v3530_v41 }
 0x103   :  { %3871 = vtanh.f32 %v352_v42  ;;  %v355_v47 = vadd.f32 %v3490_v43, %v4332_v16  ;;  %v411_v48 = vadd.f32 %v3532_v46, %v4332_v16 }
 0x104   :  { %3873 = vtanh.f32 %v408_v45 }
 0x105   :  { %v3864_v49 = vpop.eup %3863  ;;  %3875 = vtanh.f32 %v355_v47  ;;  %v3491_v50 = vpop.f32.mrb[8].mxu0 }
 0x106   :  { %v4342_v51 = vpop.eup %3865  ;;  %v3492_v52 = vpop.f32.mrb[9].mxu0  ;;  %3877 = vtanh.f32 %v411_v48 }
 0x107   :  { %v3533_v53 = vpop.f32.mrb[8].mxu1  ;;  %v3868_v54 = vpop.eup %3867  ;;  %v3493_v55 = vadd.f32 %v3492_v52, %v3491_v50 }
 0x108   :  { %v3494_v56 = vpop.f32.mrb[10].mxu0  ;;  %v3534_v57 = vpop.f32.mrb[9].mxu1  ;;  %v783_v60 = vpack.c.bf16 %v3868_v54, %v3864_v49 }
 0x109   :  { %v4344_v58 = vpop.eup %3869  ;;  %v3495_v59 = vpop.f32.mrb[11].mxu0  ;;  %v3535_v61 = vadd.f32 %v3534_v57, %v3533_v53  ;;  %v360_v63 = vadd.f32 %v3493_v55, %v4332_v16 }
 0x10a   :  { %v3536_v62 = vpop.f32.mrb[10].mxu1  ;;  %v3496_v0 = vadd.f32 %v3495_v59, %v3494_v56  ;;  %v790_v2 = vpack.c.bf16 %v4344_v58, %v4342_v51  ;;  %3689 = vmatmul.mubr.bf16.vlgmr.msra.gmra.mrb[28].mxu0 %v783_v60 }
 0x10b   :  { %v3537_v1 = vpop.f32.mrb[11].mxu1  ;;  %v416_v3 = vadd.f32 %v3535_v61, %v4332_v16  ;;  %3879 = vtanh.f32 %v360_v63  ;;  %3692 = vmatprep.mubr.msk.bf16.mxu0 %vm3988_vm0, %v3987_v22 }
 0x10c   :  { %v3538_v4 = vadd.f32 %v3537_v1, %v3536_v62  ;;  %v363_v5 = vadd.f32 %v3496_v0, %v4332_v16 }
 0x10d   :  { %3881 = vtanh.f32 %v416_v3  ;;  %v3872_v7 = vpop.eup %3871  ;;  %v3497_v8 = vpop.f32.mrb[12].mxu0 }
 0x10e   :  { %v419_v6 = vadd.f32 %v3538_v4, %v4332_v16  ;;  %3883 = vtanh.f32 %v363_v5  ;;  %v4354_v9 = vpop.eup %3873  ;;  %v3498_v10 = vpop.f32.mrb[13].mxu0 }
 0x10f   :  { %v3539_v11 = vpop.f32.mrb[12].mxu1  ;;  %v3876_v12 = vpop.eup %3875  ;;  %v3499_v13 = vadd.f32 %v3498_v10, %v3497_v8 }
 0x110   :  { %3885 = vtanh.f32 %v419_v6  ;;  %v3500_v14 = vpop.f32.mrb[14].mxu0  ;;  %v3540_v15 = vpop.f32.mrb[13].mxu1  ;;  %v784_v19 = vpack.c.bf16 %v3876_v12, %v3872_v7 }
 0x111   :  { %v4356_v17 = vpop.eup %3877  ;;  %v3501_v18 = vpop.f32.mrb[15].mxu0  ;;  %v3541_v20 = vadd.f32 %v3540_v15, %v3539_v11  ;;  %v368_v23 = vadd.f32 %v3499_v13, %v4332_v16 }
 0x112   :  { %v3542_v21 = vpop.f32.mrb[14].mxu1  ;;  %v3502_v24 = vadd.f32 %v3501_v18, %v3500_v14  ;;  %v791_v26 = vpack.c.bf16 %v4356_v17, %v4354_v9  ;;  %3693 = vmatmul.mubr.bf16.gmra.mrb[32].mxu0 %v784_v19 }
 0x113   :  { %v3543_v25 = vpop.f32.mrb[15].mxu1  ;;  %v424_v27 = vadd.f32 %v3541_v20, %v4332_v16  ;;  %3887 = vtanh.f32 %v368_v23  ;;  %3696 = vmatprep.mubr.msk.bf16.mxu0 %vm3988_vm0, %v3987_v22 }
 0x114   :  { %v3544_v28 = vadd.f32 %v3543_v25, %v3542_v21  ;;  %v371_v29 = vadd.f32 %v3502_v24, %v4332_v16 }
 0x115   :  { %3889 = vtanh.f32 %v424_v27  ;;  %v3880_v31 = vpop.eup %3879  ;;  %v3503_v32 = vpop.f32.mrb[16].mxu0 }
 0x116   :  { %v427_v30 = vadd.f32 %v3544_v28, %v4332_v16  ;;  %3891 = vtanh.f32 %v371_v29  ;;  %v3504_v34 = vpop.f32.mrb[17].mxu0  ;;  %v3545_v35 = vpop.f32.mrb[16].mxu1 }
 0x117   :  { %v4366_v33 = vpop.eup %3881  ;;  %v3505_v37 = vadd.f32 %v3504_v34, %v3503_v32  ;;  %v3506_v38 = vpop.f32.mrb[18].mxu0 }
 0x118   :  { %3893 = vtanh.f32 %v427_v30  ;;  %v3884_v36 = vpop.eup %3883  ;;  %v3546_v39 = vpop.f32.mrb[17].mxu1 }
 0x119   :  { %v3507_v41 = vpop.f32.mrb[19].mxu0  ;;  %v785_v42 = vpack.c.bf16 %v3884_v36, %v3880_v31  ;;  %v3547_v43 = vadd.f32 %v3546_v39, %v3545_v35  ;;  %v3548_v44 = vpop.f32.mrb[18].mxu1  ;;  %v376_v45 = vadd.f32 %v3505_v37, %v4332_v16 }
 0x11a   :  { %v4368_v40 = vpop.eup %3885  ;;  %v3508_v46 = vadd.f32 %v3507_v41, %v3506_v38  ;;  %v3549_v47 = vpop.f32.mrb[19].mxu1 }
 0x11b   :  { %v792_v48 = vpack.c.bf16 %v4368_v40, %v4366_v33  ;;  %3697 = vmatmul.mubr.bf16.gmra.mrb[36].mxu0 %v785_v42  ;;  %v432_v49 = vadd.f32 %v3547_v43, %v4332_v16  ;;  %v3550_v50 = vadd.f32 %v3549_v47, %v3548_v44  ;;  %3895 = vtanh.f32 %v376_v45 }
 0x11c   :  { %v379_v52 = vadd.f32 %v3508_v46, %v4332_v16  ;;  %3700 = vmatprep.mubr.msk.bf16.mxu0 %vm3988_vm0, %v3987_v22 }
 0x11d   :  { %3897 = vtanh.f32 %v432_v49  ;;  %v435_v53 = vadd.f32 %v3550_v50, %v4332_v16  ;;  %v3888_v54 = vpop.eup %3887  ;;  %v3509_v55 = vpop.f32.mrb[20].mxu0 }
 0x11e   :  { %3899 = vtanh.f32 %v379_v52  ;;  %v3510_v57 = vpop.f32.mrb[21].mxu0  ;;  %v3551_v59 = vpop.f32.mrb[20].mxu1 }
 0x11f   :  { %v4378_v56 = vpop.eup %3889  ;;  %3901 = vtanh.f32 %v435_v53  ;;  %v3511_v61 = vadd.f32 %v3510_v57, %v3509_v55  ;;  %v3512_v62 = vpop.f32.mrb[22].mxu0 }
 0x120   :  { %v3892_v60 = vpop.eup %3891  ;;  %v3552_v63 = vpop.f32.mrb[21].mxu1 }
 0x121   :  { %v3513_v1 = vpop.f32.mrb[23].mxu0  ;;  %v786_v3 = vpack.c.bf16 %v3892_v60, %v3888_v54  ;;  %v3553_v4 = vadd.f32 %v3552_v63, %v3551_v59  ;;  %v3554_v5 = vpop.f32.mrb[22].mxu1  ;;  %v384_v6 = vadd.f32 %v3511_v61, %v4332_v16 }
 0x122   :  { %v3894_v0 = vpop.eup %3893  ;;  %v3514_v7 = vadd.f32 %v3513_v1, %v3512_v62  ;;  %v3555_v8 = vpop.f32.mrb[23].mxu1 }
 0x123   :  { %v793_v10 = vpack.c.bf16 %v3894_v0, %v4378_v56  ;;  %3701 = vmatmul.mubr.bf16.gmra.mrb[40].mxu0 %v786_v3  ;;  %3903 = vtanh.f32 %v384_v6  ;;  %v440_v17 = vadd.f32 %v3553_v4, %v4332_v16 }
 0x124   :  { %v387_v11 = vadd.f32 %v3514_v7, %v4332_v16  ;;  %3704 = vmatprep.mubr.msk.bf16.mxu0 %vm3988_vm0, %v3987_v22 }
 0x125   :  { %v3896_v12 = vpop.eup %3895  ;;  %v3515_v13 = vpop.f32.mrb[24].mxu0 }
 0x126   :  { %3905 = vtanh.f32 %v387_v11  ;;  %v3516_v15 = vpop.f32.mrb[25].mxu0  ;;  %v3573_v37 = vpop.f32.mrb[24].mxu1 }
 0x127   :  { %v3898_v14 = vpop.eup %3897  ;;  %v3517_v19 = vadd.f32 %v3516_v15, %v3515_v13  ;;  %v3518_v20 = vpop.f32.mrb[26].mxu0 }
 0x128   :  { %v3900_v18 = vpop.eup %3899  ;;  %v3519_v23 = vpop.f32.mrb[27].mxu0 }
 0x129   :  { %v3902_v21 = vpop.eup %3901  ;;  %v787_v24 = vpack.c.bf16 %v3900_v18, %v3896_v12  ;;  %v392_v25 = vadd.f32 %v3517_v19, %v4332_v16  ;;  %v3520_v27 = vadd.f32 %v3519_v23, %v3518_v20  ;;  %v3574_v38 = vpop.f32.mrb[25].mxu1 }
 0x12a   :  { %v794_v28 = vpack.c.bf16 %v3902_v21, %v3898_v14  ;;  %v4403_v39 = vadd.f32 %v3574_v38, %v3573_v37  ;;  %v3576_v41 = vpop.f32.mrb[26].mxu1 }
 0x12b   :  { %3705 = vmatmul.mubr.bf16.gmra.mrb[44].mxu0 %v787_v24  ;;  %v395_v29 = vadd.f32 %v3520_v27, %v4332_v16  ;;  %3907 = vtanh.f32 %v392_v25  ;;  %v3577_v42 = vpop.f32.mrb[27].mxu1 }
 0x12c   :  { %3708 = vmatprep.mubr.msk.bf16.mxu0 %vm3988_vm0, %v3987_v22  ;;  %v4405_v43 = vadd.f32 %v3577_v42, %v3576_v41 }
 0x12d   :  { %3909 = vtanh.f32 %v395_v29  ;;  %v3904_v30 = vpop.eup %3903  ;;  %v3579_v51 = vpop.f32.mrb[28].mxu1 }
 0x12e   :  { %v3580_v58 = vpop.f32.mrb[29].mxu1  ;;  %3911 = vtanh.f32 %v440_v17 }
 0x12f   :  { %v3582_v9 = vpop.f32.mrb[30].mxu1 }
 0x130   :  { %v3906_v31 = vpop.eup %3905 }
 0x131   :  { %v788_v32 = vpack.c.bf16 %v3906_v31, %v3904_v30 }
 0x133   :  { %3709 = vmatmul.mubr.bf16.gmra.mrb[48].mxu0 %v788_v32 }
 0x134   :  { %3712 = vmatprep.mubr.msk.bf16.mxu0 %vm3988_vm0, %v3987_v22 }
 0x135   :  { %v3908_v34 = vpop.eup %3907 }
 0x137   :  { %v3910_v35 = vpop.eup %3909 }
 0x138   :  { %v789_v36 = vpack.c.bf16 %v3910_v35, %v3908_v34  ;;  %v3912_v50 = vpop.eup %3911 }
 0x139   :  { %v795_v56 = vpack.c.bf16 %v3912_v50, %v3912_v50 }
 0x13b   :  { %3713 = vmatmul.mubr.bf16.gmra.mrb[52].mxu0 %v789_v36 }
 0x13c   :  { %3716 = vmatprep.mubr.msk.bf16.mxu0 %vm3988_vm0, %v3987_v22 }
 0x143   :  { %3717 = vmatmul.mubr.bf16.gmra.mrb[56].mxu0 %v790_v2  ;;  %v4412_v2 = vadd.f32 %v3580_v58, %v3579_v51 }
 0x144   :  { %3720 = vmatprep.mubr.msk.bf16.mxu0 %vm3988_vm0, %v3987_v22 }
 0x14b   :  { %3721 = vmatmul.mubr.bf16.gmra.mrb[60].mxu0 %v791_v26  ;;  %v3583_v26 = vpop.f32.mrb[31].mxu1 }
 0x14c   :  { %3724 = vmatprep.mubr.msk.bf16.mxu0 %vm3988_vm0, %v3987_v22  ;;  %v4415_v44 = vadd.f32 %v3583_v26, %v3582_v9  ;;  %v3585_v45 = vpop.f32.mrb[32].mxu1 }
 0x14d   :  { %v3586_v33 = vpop.f32.mrb[33].mxu1 }
 0x14e   :  { %v4419_v40 = vadd.f32 %v3586_v33, %v3585_v45  ;;  %v3588_v46 = vpop.f32.mrb[34].mxu1 }
 0x14f   :  { %v3589_v47 = vpop.f32.mrb[35].mxu1 }
 0x150   :  { %v3591_v49 = vpop.f32.mrb[36].mxu1 }
 0x151   :  { %v3592_v52 = vpop.f32.mrb[37].mxu1 }
 0x152   :  { %v4425_v53 = vadd.f32 %v3592_v52, %v3591_v49  ;;  %v3594_v54 = vpop.f32.mrb[38].mxu1 }
 0x153   :  { %3725 = vmatmul.mubr.bf16.gmra.mrb[64].mxu0 %v792_v48  ;;  %v4421_v48 = vadd.f32 %v3589_v47, %v3588_v46  ;;  %v3595_v55 = vpop.f32.mrb[39].mxu1 }
 0x154   :  { %3728 = vmatprep.mubr.msk.bf16.mxu0 %vm3988_vm0, %v3987_v22  ;;  %v4427_v57 = vadd.f32 %v3595_v55, %v3594_v54  ;;  %v3597_v59 = vpop.f32.mrb[40].mxu1  ;;  %v657_v55 = vadd.f32 %v4403_v39, %v4332_v16 }
 0x155   :  { %v3598_v60 = vpop.f32.mrb[41].mxu1 }
 0x156   :  { %v4429_v61 = vadd.f32 %v3598_v60, %v3597_v59  ;;  %v3600_v62 = vpop.f32.mrb[42].mxu1  ;;  %3913 = vtanh.f32 %v657_v55  ;;  %v665_v59 = vadd.f32 %v4412_v2, %v4332_v16  ;;  %v668_v60 = vadd.f32 %v4415_v44, %v4332_v16 }
 0x157   :  { %v3601_v63 = vpop.f32.mrb[43].mxu1  ;;  %v676_v2 = vadd.f32 %v4421_v48, %v4332_v16  ;;  %v681_v44 = vadd.f32 %v4425_v53, %v4332_v16 }
 0x158   :  { %v4431_v0 = vadd.f32 %v3601_v63, %v3600_v62  ;;  %v3603_v1 = vpop.f32.mrb[44].mxu1  ;;  %v673_v63 = vadd.f32 %v4419_v40, %v4332_v16  ;;  %v689_v48 = vadd.f32 %v4429_v61, %v4332_v16 }
 0x159   :  { %v3604_v3 = vpop.f32.mrb[45].mxu1 }
 0x15a   :  { %v3606_v4 = vpop.f32.mrb[46].mxu1 }
 0x15b   :  { %3729 = vmatmul.mubr.bf16.gmra.mrb[68].mxu0 %v793_v10  ;;  %v3607_v5 = vpop.f32.mrb[47].mxu1 }
 0x15c   :  { %3732 = vmatprep.mubr.msk.bf16.mxu0 %vm3988_vm0, %v3987_v22  ;;  %v4435_v6 = vadd.f32 %v3607_v5, %v3606_v4  ;;  %v3609_v7 = vpop.f32.mrb[48].mxu1 }
 0x15d   :  { %v3610_v8 = vpop.f32.mrb[49].mxu1 }
 0x15e   :  { %v4437_v10 = vadd.f32 %v3610_v8, %v3609_v7  ;;  %v3612_v11 = vpop.f32.mrb[50].mxu1 }
 0x15f   :  { %v3613_v12 = vpop.f32.mrb[51].mxu1 }
 0x160   :  { %v4439_v13 = vadd.f32 %v3613_v12, %v3612_v11  ;;  %v3615_v14 = vpop.f32.mrb[52].mxu1  ;;  %v3914_v62 = vpop.eup %3913 }
 0x161   :  { %v3616_v15 = vpop.f32.mrb[53].mxu1 }
 0x162   :  { %v4441_v18 = vadd.f32 %v3616_v15, %v3615_v14  ;;  %v3618_v19 = vpop.f32.mrb[54].mxu1 }
 0x163   :  { %3733 = vmatmul.mubr.bf16.gmra.mrb[72].mxu0 %v794_v28  ;;  %v3619_v20 = vpop.f32.mrb[55].mxu1 }
 0x164   :  { %3736 = vmatprep.mubr.msk.bf16.mxu0 %vm3988_vm0, %v3987_v22  ;;  %v4433_v22 = vadd.f32 %v3604_v3, %v3603_v1  ;;  %v4443_v21 = vadd.f32 %v3619_v20, %v3618_v19 }
 0x165   :  { %v3621_v23 = vpop.f32.mrb[56].mxu1 }
 0x166   :  { %v3622_v24 = vpop.f32.mrb[57].mxu1 }
 0x167   :  { %v4445_v25 = vadd.f32 %v3622_v24, %v3621_v23  ;;  %v3624_v27 = vpop.f32.mrb[58].mxu1  ;;  %v684_v23 = vadd.f32 %v4427_v57, %v4332_v16 }
 0x168   :  { %v3625_v28 = vpop.f32.mrb[59].mxu1 }
 0x169   :  { %v4447_v29 = vadd.f32 %v3625_v28, %v3624_v27 }
 0x16b   :  { %3737 = vmatmul.mubr.bf16.gmra.mrb[76].mxu0 %v795_v56  ;;  %v660_v56 = vadd.f32 %v4405_v43, %v4332_v16 }
 0x16d   :  { %v3627_v30 = vpop.f32.mrb[60].mxu1  ;;  %3915 = vtanh.f32 %v660_v56 }
 0x16e   :  { %v3628_v31 = vpop.f32.mrb[61].mxu1  ;;  %3917 = vtanh.f32 %v665_v59 }
 0x16f   :  { %v4449_v32 = vadd.f32 %v3628_v31, %v3627_v30  ;;  %v3630_v34 = vpop.f32.mrb[62].mxu1  ;;  %3919 = vtanh.f32 %v668_v60 }
 0x170   :  { %v3631_v35 = vpop.f32.mrb[63].mxu1  ;;  %3921 = vtanh.f32 %v673_v63  ;;  %v708_v63 = vadd.f32 %v4439_v13, %v4332_v16  ;;  %v721_v13 = vadd.f32 %v4445_v25, %v4332_v16 }
 0x171   :  { %v4451_v36 = vadd.f32 %v3631_v35, %v3630_v34  ;;  %3923 = vtanh.f32 %v676_v2  ;;  %v716_v2 = vadd.f32 %v4443_v21, %v4332_v16  ;;  %v729_v21 = vadd.f32 %v4449_v32, %v4332_v16 }
 0x172   :  { %3925 = vtanh.f32 %v681_v44 }
 0x173   :  { %3927 = vtanh.f32 %v684_v23 }
 0x174   :  { %3929 = vtanh.f32 %v689_v48 }
 0x175   :  { %v3633_v37 = vpop.f32.mrb[64].mxu1 }
 0x176   :  { %v3634_v38 = vpop.f32.mrb[65].mxu1 }
 0x177   :  { %v4453_v41 = vadd.f32 %v3634_v38, %v3633_v37  ;;  %v3636_v42 = vpop.f32.mrb[66].mxu1  ;;  %v3916_v4 = vpop.eup %3915  ;;  %v692_v37 = vadd.f32 %v4431_v0, %v4332_v16  ;;  %v697_v38 = vadd.f32 %v4433_v22, %v4332_v16  ;;  %v700_v0 = vadd.f32 %v4435_v6, %v4332_v16 }
 0x178   :  { %v3637_v51 = vpop.f32.mrb[67].mxu1  ;;  %v3918_v8 = vpop.eup %3917  ;;  %v705_v22 = vadd.f32 %v4437_v10, %v4332_v16 }
 0x179   :  { %v4455_v58 = vadd.f32 %v3637_v51, %v3636_v42  ;;  %v3920_v14 = vpop.eup %3919  ;;  %3931 = vtanh.f32 %v692_v37 }
 0x17a   :  { %v3922_v24 = vpop.eup %3921  ;;  %3933 = vtanh.f32 %v697_v38 }
 0x17b   :  { %v3924_v30 = vpop.eup %3923  ;;  %3935 = vtanh.f32 %v700_v0 }
 0x17c   :  { %v3926_v57 = vpop.eup %3925  ;;  %3937 = vtanh.f32 %v705_v22 }
 0x17d   :  { %v3639_v9 = vpop.f32.mrb[68].mxu1  ;;  %3939 = vtanh.f32 %v708_v63 }
 0x17e   :  { %v3640_v17 = vpop.f32.mrb[69].mxu1 }
 0x17f   :  { %v4457_v26 = vadd.f32 %v3640_v17, %v3639_v9  ;;  %v3642_v45 = vpop.f32.mrb[70].mxu1  ;;  %v3989_v9 = vmov 0   ;;  %v3928_v17 = vpop.eup %3927 }
 0x180   :  { %v3643_v33 = vpop.f32.mrb[71].mxu1  ;;  %3761 = vset.pattern.permute.xlu1 %v3989_v9  ;;  %3762 = vset.pattern.permute.xlu0 %v3989_v9 }
 0x181   :  { %v4459_v46 = vadd.f32 %v3643_v33, %v3642_v45 }
 0x185   :  { %v3645_v47 = vpop.f32.mrb[72].mxu1 }
 0x186   :  { %v3646_v49 = vpop.f32.mrb[73].mxu1 }
 0x187   :  { %v4461_v50 = vadd.f32 %v3646_v49, %v3645_v47  ;;  %v3648_v52 = vpop.f32.mrb[74].mxu1  ;;  %v3930_v49 = vpop.eup %3929 }
 0x188   :  { %v3649_v54 = vpop.f32.mrb[75].mxu1  ;;  %v3932_v56 = vpop.eup %3931 }
 0x189   :  { %v3934_v6 = vpop.eup %3933 }
 0x1dd   :  { %v894_v1 = vpop.f32.mrb[28].mxu0 }
 0x1de   :  { %v3690_v3 = vpop.f32.mrb[29].mxu0  ;;  %v996_v39 = vmul.f32 %v3914_v62, %v894_v1  ;;  %v713_v1 = vadd.f32 %v4441_v18, %v4332_v16 }
 0x1df   :  { %v897_v5 = vpop.f32.mrb[30].mxu0 }
 0x1e0   :  { %v997_v7 = vmul.f32 %v3916_v4, %v897_v5  ;;  %1021 = vadd.xlane.f32.xlu0 %v996_v39  ;;  %v3691_v43 = vpop.f32.mrb[31].mxu0  ;;  %v3936_v4 = vpop.eup %3935  ;;  %3941 = vtanh.f32 %v713_v1 }
 0x1e1   :  { %3943 = vtanh.f32 %v716_v2  ;;  %v1096_v2 = vlaneseq }
 0x1e2   :  { %3945 = vtanh.f32 %v721_v13 }
 0x1e3   :  { %vm3369_vm0 = vcmp.lt.s32.totalorder %v1096_v2, 200 }
 0x1e4   :  { %1023 = vadd.xlane.f32.xlu0 %v997_v7 }
 0x1e5   :  { %v902_v11 = vpop.f32.mrb[32].mxu0 }
 0x1e6   :  { %v3694_v40 = vpop.f32.mrb[33].mxu0  ;;  %v998_v12 = vmul.f32 %v3918_v8, %v902_v11  ;;  %v3938_v8 = vpop.eup %3937 }
 0x1e7   :  { %v905_v15 = vpop.f32.mrb[34].mxu0  ;;  %v3940_v40 = vpop.eup %3939 }
 0x1e8   :  { %v999_v19 = vmul.f32 %v3920_v14, %v905_v15  ;;  %1025 = vadd.xlane.f32.xlu1 %v998_v12  ;;  %v3695_v20 = vpop.f32.mrb[35].mxu0 }
 0x1ea   :  { %v3942_v20 = vpop.eup %3941 }
 0x1eb   :  { %v3944_v48 = vpop.eup %3943 }
 0x1ec   :  { %1027 = vadd.xlane.f32.xlu1 %v999_v19  ;;  %v724_v19 = vadd.f32 %v4447_v29, %v4332_v16  ;;  %v737_v29 = vadd.f32 %v4453_v41, %v4332_v16 }
 0x1ee   :  { %v910_v27 = vpop.f32.mrb[36].mxu0  ;;  %3947 = vtanh.f32 %v724_v19 }
 0x1ef   :  { %v1000_v53 = vmul.f32 %v3922_v24, %v910_v27  ;;  %v3698_v28 = vpop.f32.mrb[37].mxu0  ;;  %3949 = vtanh.f32 %v729_v21 }
 0x1f0   :  { %v913_v31 = vpop.f32.mrb[38].mxu0 }
 0x1f1   :  { %v1001_v34 = vmul.f32 %v3924_v30, %v913_v31  ;;  %1029 = vadd.xlane.f32.xlu0 %v1000_v53  ;;  %v3699_v35 = vpop.f32.mrb[39].mxu0  ;;  %v732_v30 = vadd.f32 %v4451_v36, %v4332_v16  ;;  %v3946_v31 = vpop.eup %3945 }
 0x1f3   :  { %1031 = vadd.xlane.f32.xlu1 %v1001_v34  ;;  %3951 = vtanh.f32 %v732_v30 }
 0x1f4   :  { %3953 = vtanh.f32 %v737_v29 }
 0x1f6   :  { %v918_v42 = vpop.f32.mrb[40].mxu0 }
 0x1f7   :  { %v1002_v61 = vmul.f32 %v3926_v57, %v918_v42  ;;  %v3702_v51 = vpop.f32.mrb[41].mxu0 }
 0x1f8   :  { %v921_v45 = vpop.f32.mrb[42].mxu0  ;;  %v3948_v37 = vpop.eup %3947  ;;  %v745_v51 = vadd.f32 %v4457_v26, %v4332_v16 }
 0x1f9   :  { %v1003_v33 = vmul.f32 %v3928_v17, %v921_v45  ;;  %1033 = vadd.xlane.f32.xlu0 %v1002_v61  ;;  %v3703_v47 = vpop.f32.mrb[43].mxu0  ;;  %v740_v61 = vadd.f32 %v4455_v58, %v4332_v16  ;;  %v3950_v36 = vpop.eup %3949  ;;  %v753_v58 = vadd.f32 %v4461_v50, %v4332_v16 }
 0x1fb   :  { %1035 = vadd.xlane.f32.xlu1 %v1003_v33  ;;  %3955 = vtanh.f32 %v740_v61 }
 0x1fc   :  { %3957 = vtanh.f32 %v745_v51 }
 0x1fd   :  { %v3952_v45 = vpop.eup %3951 }
 0x1fe   :  { %v926_v52 = vpop.f32.mrb[44].mxu0  ;;  %v3954_v22 = vpop.eup %3953 }
 0x1ff   :  { %v1004_v54 = vmul.f32 %v3930_v49, %v926_v52  ;;  %v3706_v55 = vpop.f32.mrb[45].mxu0  ;;  %v748_v49 = vadd.f32 %v4459_v46, %v4332_v16 }
 0x200   :  { %v929_v59 = vpop.f32.mrb[46].mxu0 }
 0x201   :  { %v1005_v60 = vmul.f32 %v3932_v56, %v929_v59  ;;  %1037 = vadd.xlane.f32.xlu0 %v1004_v54  ;;  %v3707_v62 = vpop.f32.mrb[47].mxu0  ;;  %3959 = vtanh.f32 %v748_v49 }
 0x202   :  { %3961 = vtanh.f32 %v753_v58 }
 0x203   :  { %1039 = vadd.xlane.f32.xlu1 %v1005_v60 }
 0x205   :  { %v3956_v55 = vpop.eup %3955 }
 0x206   :  { %v934_v3 = vpop.f32.mrb[48].mxu0  ;;  %v3958_v62 = vpop.eup %3957 }
 0x207   :  { %v1006_v10 = vmul.f32 %v3934_v6, %v934_v3  ;;  %v3710_v39 = vpop.f32.mrb[49].mxu0 }
 0x208   :  { %v937_v5 = vpop.f32.mrb[50].mxu0 }
 0x209   :  { %v1007_v7 = vmul.f32 %v3936_v4, %v937_v5  ;;  %1041 = vadd.xlane.f32.xlu1 %v1006_v10  ;;  %v3711_v43 = vpop.f32.mrb[51].mxu0 }
 0x20b   :  { %v3960_v1 = vpop.eup %3959 }
 0x20c   :  { %v3962_v16 = vpop.eup %3961 }
 0x20d   :  { %1043 = vadd.xlane.f32.xlu1 %v1007_v7 }
 0x20e   :  { %v942_v44 = vpop.f32.mrb[52].mxu0 }
 0x20f   :  { %v1008_v18 = vmul.f32 %v3938_v8, %v942_v44  ;;  %v3714_v11 = vpop.f32.mrb[53].mxu0  ;;  %v3990_v8 = vmov 1966171168   ;;  %v4514_v44 = vshrl.u32 %v1096_v2, 7 }
 0x210   :  { %v945_v12 = vpop.f32.mrb[54].mxu0  ;;  %v1901_v13 = vunpack.c.l.s4 %v3990_v8 }
 0x211   :  { %v1009_v14 = vmul.f32 %v3940_v40, %v945_v12  ;;  %1045 = vadd.xlane.f32.xlu1 %v1008_v18  ;;  %v3715_v15 = vpop.f32.mrb[55].mxu0  ;;  %v4517_v11 = vsub.s32 0, %v4514_v44  ;;  %v4520_v40 = vsub.s32 1, %v4514_v44  ;;  %v4523_v12 = vsub.s32 2, %v4514_v44 }
 0x212   :  { %v1902_v18 = vunpack.c.0.s8 %v1901_v13  ;;  %v4529_v15 = vsub.s32 4, %v4514_v44  ;;  %v4532_v19 = vsub.s32 5, %v4514_v44  ;;  %v4538_v21 = vsub.s32 7, %v4514_v44 }
 0x215   :  { %1047 = vadd.xlane.f32.xlu1 %v1009_v14  ;;  %v4526_v14 = vsub.s32 3, %v4514_v44 }
 0x216   :  { %v950_v23 = vpop.f32.mrb[56].mxu0 }
 0x217   :  { %v1010_v25 = vmul.f32 %v3942_v20, %v950_v23  ;;  %v3718_v24 = vpop.f32.mrb[57].mxu0  ;;  %v4535_v20 = vsub.s32 6, %v4514_v44 }
 0x218   :  { %v953_v27 = vpop.f32.mrb[58].mxu0 }
 0x219   :  { %v1011_v53 = vmul.f32 %v3944_v48, %v953_v27  ;;  %1049 = vadd.xlane.f32.xlu1 %v1010_v25  ;;  %v3719_v28 = vpop.f32.mrb[59].mxu0  ;;  %v4541_v25 = vsub.s32 %v1902_v18, %v4514_v44 }
 0x21d   :  { %1051 = vadd.xlane.f32.xlu1 %v1011_v53 }
 0x21e   :  { %v958_v34 = vpop.f32.mrb[60].mxu0 }
 0x21f   :  { %v1012_v32 = vmul.f32 %v3946_v31, %v958_v34  ;;  %v3722_v35 = vpop.f32.mrb[61].mxu0 }
 0x220   :  { %v961_v57 = vpop.f32.mrb[62].mxu0 }
 0x221   :  { %v1013_v38 = vmul.f32 %v3948_v37, %v961_v57  ;;  %1053 = vadd.xlane.f32.xlu1 %v1012_v32  ;;  %v3723_v42 = vpop.f32.mrb[63].mxu0 }
 0x223   :  { %1055 = vadd.xlane.f32.xlu0 %v1013_v38 }
 0x226   :  { %v966_v9 = vpop.f32.mrb[64].mxu0 }
 0x227   :  { %v1014_v41 = vmul.f32 %v3950_v36, %v966_v9  ;;  %v3726_v17 = vpop.f32.mrb[65].mxu0 }
 0x228   :  { %v969_v33 = vpop.f32.mrb[66].mxu0 }
 0x229   :  { %v1015_v47 = vmul.f32 %v3952_v45, %v969_v33  ;;  %1057 = vadd.xlane.f32.xlu0 %v1014_v41  ;;  %v3727_v0 = vpop.f32.mrb[67].mxu0 }
 0x22d   :  { %1059 = vadd.xlane.f32.xlu0 %v1015_v47 }
 0x22e   :  { %v974_v52 = vpop.f32.mrb[68].mxu0 }
 0x22f   :  { %v1016_v26 = vmul.f32 %v3954_v22, %v974_v52  ;;  %v3730_v54 = vpop.f32.mrb[69].mxu0 }
 0x230   :  { %v977_v56 = vpop.f32.mrb[70].mxu0 }
 0x231   :  { %v1017_v59 = vmul.f32 %v3956_v55, %v977_v56  ;;  %1061 = vadd.xlane.f32.xlu0 %v1016_v26  ;;  %v3731_v60 = vpop.f32.mrb[71].mxu0 }
 0x235   :  { %1063 = vadd.xlane.f32.xlu0 %v1017_v59 }
 0x236   :  { %v982_v63 = vpop.f32.mrb[72].mxu0 }
 0x237   :  { %v1018_v6 = vmul.f32 %v3958_v62, %v982_v63  ;;  %v3734_v46 = vpop.f32.mrb[73].mxu0 }
 0x238   :  { %v985_v3 = vpop.f32.mrb[74].mxu0 }
 0x239   :  { %v1019_v10 = vmul.f32 %v3960_v1, %v985_v3  ;;  %1065 = vadd.xlane.f32.xlu0 %v1018_v6  ;;  %v3735_v39 = vpop.f32.mrb[75].mxu0 }
 0x23d   :  { %1067 = vadd.xlane.f32.xlu0 %v1019_v10 }
 0x23e   :  { %v990_v50 = vpop.f32.mrb[76].mxu0 }
 0x23f   :  { %v1020_v4 = vmul.f32 %v3962_v16, %v990_v50  ;;  %v3738_v5 = vpop.f32.mrb[77].mxu0 }
 0x240   :  { %v993_v7 = vpop.f32.mrb[78].mxu0 }
 0x241   :  { %1069 = vadd.xlane.f32.xlu0 %v1020_v4  ;;  %v3739_v43 = vpop.f32.mrb[79].mxu0 }
 0x26d   :  { %v1022_v23 = vpop.xlane.xlu0 %1021 }
 0x26e   :  { %v1099_v24 = vrot.slane %v1022_v23, %v4517_v11  ;;  %v1103_v48 = vrot.slane %v1022_v23, %v4520_v40  ;;  %v1107_v27 = vrot.slane %v1022_v23, %v4523_v12  ;;  %v1111_v53 = vrot.slane %v1022_v23, %v4526_v14 }
 0x26f   :  { %v1115_v28 = vrot.slane %v1022_v23, %v4529_v15  ;;  %v1119_v30 = vrot.slane %v1022_v23, %v4532_v19  ;;  %v1123_v31 = vrot.slane %v1022_v23, %v4535_v20  ;;  %v1127_v29 = vrot.slane %v1022_v23, %v4538_v21 }
 0x270   :  { %v1896_v34 = vcombine.low %v1099_v24, %v1103_v48  ;;  %v1897_v32 = vcombine.low %v1107_v27, %v1111_v53 }
 0x271   :  { %v1024_v35 = vpop.xlane.xlu0 %1023  ;;  %v1898_v37 = vcombine.low %v1115_v28, %v1119_v30  ;;  %v1899_v57 = vcombine.low %v1123_v31, %v1127_v29 }
 0x272   :  { %v1906_v38 = vrot.slane %v1896_v34, %v4541_v25  ;;  %v1913_v42 = vrot.slane %v1897_v32, %v4541_v25  ;;  %v1131_v61 = vrot.slane %v1024_v35, %v4517_v11  ;;  %v1135_v36 = vrot.slane %v1024_v35, %v4520_v40 }
 0x273   :  { %v1920_v51 = vrot.slane %v1898_v37, %v4541_v25  ;;  %v1927_v9 = vrot.slane %v1899_v57, %v4541_v25  ;;  %v1139_v41 = vrot.slane %v1024_v35, %v4523_v12  ;;  %v1143_v17 = vrot.slane %v1024_v35, %v4526_v14 }
 0x274   :  { %v1928_v45 = vcombine.low %v1906_v38, %v1913_v42  ;;  %v1147_v33 = vrot.slane %v1024_v35, %v4529_v15  ;;  %v1151_v47 = vrot.slane %v1024_v35, %v4532_v19  ;;  %v1155_v0 = vrot.slane %v1024_v35, %v4535_v20 }
 0x275   :  { %v1026_v49 = vpop.xlane.xlu1 %1025  ;;  %v1929_v22 = vcombine.low %v1920_v51, %v1927_v9  ;;  %v1159_v58 = vrot.slane %v1024_v35, %v4538_v21  ;;  %v1945_v52 = vcombine.low %v1131_v61, %v1135_v36  ;;  %v1946_v26 = vcombine.low %v1139_v41, %v1143_v17 }
 0x276   :  { %v1936_v54 = vrot.slane %v1928_v45, %v4541_v25  ;;  %v1947_v55 = vcombine.low %v1147_v33, %v1151_v47  ;;  %v1163_v56 = vrot.slane %v1026_v49, %v4517_v11  ;;  %v1167_v59 = vrot.slane %v1026_v49, %v4520_v40 }
 0x277   :  { %v1943_v60 = vrot.slane %v1929_v22, %v4541_v25  ;;  %v1948_v62 = vcombine.low %v1155_v0, %v1159_v58  ;;  %v1955_v63 = vrot.slane %v1945_v52, %v4541_v25  ;;  %v1962_v6 = vrot.slane %v1946_v26, %v4541_v25 }
 0x278   :  { %v1969_v46 = vrot.slane %v1947_v55, %v4541_v25  ;;  %v1171_v1 = vrot.slane %v1026_v49, %v4523_v12  ;;  %v1175_v3 = vrot.slane %v1026_v49, %v4526_v14  ;;  %v1179_v10 = vrot.slane %v1026_v49, %v4529_v15 }
 0x279   :  { %v1028_v39 = vpop.xlane.xlu1 %1027  ;;  %v1944_v16 = vcombine.low %v1936_v54, %v1943_v60  ;;  %v1976_v50 = vrot.slane %v1948_v62, %v4541_v25  ;;  %v1977_v4 = vcombine.low %v1955_v63, %v1962_v6  ;;  %v1183_v5 = vrot.slane %v1026_v49, %v4532_v19 }
 0x27a   :  { %v1187_v7 = vrot.slane %v1026_v49, %v4535_v20  ;;  %v1191_v43 = vrot.slane %v1026_v49, %v4538_v21  ;;  %v1994_v8 = vcombine.low %v1163_v56, %v1167_v59  ;;  %v1995_v13 = vcombine.low %v1171_v1, %v1175_v3 }
 0x27b   :  { %3122 = vperm.xlu1 %3761, %v1944_v16   ;;  %v1978_v18 = vcombine.low %v1969_v46, %v1976_v50  ;;  %v1985_v23 = vrot.slane %v1977_v4, %v4541_v25  ;;  %v1996_v24 = vcombine.low %v1179_v10, %v1183_v5  ;;  %v1195_v48 = vrot.slane %v1028_v39, %v4517_v11 }
 0x27c   :  { %v1997_v27 = vcombine.low %v1187_v7, %v1191_v43  ;;  %v2004_v53 = vrot.slane %v1994_v8, %v4541_v25  ;;  %v2011_v28 = vrot.slane %v1995_v13, %v4541_v25  ;;  %v1199_v30 = vrot.slane %v1028_v39, %v4520_v40 }
 0x27d   :  { %v1992_v31 = vrot.slane %v1978_v18, %v4541_v25  ;;  %v2018_v29 = vrot.slane %v1996_v24, %v4541_v25  ;;  %v1203_v34 = vrot.slane %v1028_v39, %v4523_v12  ;;  %v1207_v32 = vrot.slane %v1028_v39, %v4526_v14 }
 0x27e   :  { %v1030_v35 = vpop.xlane.xlu0 %1029  ;;  %v2025_v37 = vrot.slane %v1997_v27, %v4541_v25  ;;  %v2026_v57 = vcombine.low %v2004_v53, %v2011_v28  ;;  %v1211_v38 = vrot.slane %v1028_v39, %v4529_v15  ;;  %v1215_v42 = vrot.slane %v1028_v39, %v4532_v19 }
 0x27f   :  { %v1993_v61 = vcombine.low %v1985_v23, %v1992_v31  ;;  %v1219_v36 = vrot.slane %v1028_v39, %v4535_v20  ;;  %v1223_v51 = vrot.slane %v1028_v39, %v4538_v21  ;;  %v2043_v9 = vcombine.low %v1195_v48, %v1199_v30 }
 0x280   :  { %v2027_v41 = vcombine.low %v2018_v29, %v2025_v37  ;;  %v2034_v17 = vrot.slane %v2026_v57, %v4541_v25  ;;  %v2044_v45 = vcombine.low %v1203_v34, %v1207_v32  ;;  %v2045_v33 = vcombine.low %v1211_v38, %v1215_v42  ;;  %v1032_v55 = vpop.xlane.xlu1 %1031 }
 0x281   :  { %3125 = vperm.xlu0 %3762, %v1993_v61   ;;  %v2046_v47 = vcombine.low %v1219_v36, %v1223_v51  ;;  %v2053_v0 = vrot.slane %v2043_v9, %v4541_v25  ;;  %v1227_v49 = vrot.slane %v1030_v35, %v4517_v11  ;;  %v1231_v22 = vrot.slane %v1030_v35, %v4520_v40 }
 0x282   :  { %v2041_v58 = vrot.slane %v2027_v41, %v4541_v25  ;;  %v2060_v52 = vrot.slane %v2044_v45, %v4541_v25  ;;  %v2067_v26 = vrot.slane %v2045_v33, %v4541_v25  ;;  %v1235_v54 = vrot.slane %v1030_v35, %v4523_v12 }
 0x283   :  { %v2074_v56 = vrot.slane %v2046_v47, %v4541_v25  ;;  %v1239_v59 = vrot.slane %v1030_v35, %v4526_v14  ;;  %v1243_v60 = vrot.slane %v1030_v35, %v4529_v15  ;;  %v1247_v62 = vrot.slane %v1030_v35, %v4532_v19 }
 0x284   :  { %v2042_v63 = vcombine.low %v2034_v17, %v2041_v58  ;;  %v2075_v6 = vcombine.low %v2053_v0, %v2060_v52  ;;  %v1251_v46 = vrot.slane %v1030_v35, %v4535_v20  ;;  %v1255_v1 = vrot.slane %v1030_v35, %v4538_v21 }
 0x285   :  { %v2076_v3 = vcombine.low %v2067_v26, %v2074_v56  ;;  %v2092_v10 = vcombine.low %v1227_v49, %v1231_v22  ;;  %v2093_v39 = vcombine.low %v1235_v54, %v1239_v59  ;;  %v2094_v16 = vcombine.low %v1243_v60, %v1247_v62 }
 0x286   :  { %3128 = vperm.xlu1 %3761, %v2042_v63   ;;  %v2083_v50 = vrot.slane %v2075_v6, %v4541_v25  ;;  %v2095_v4 = vcombine.low %v1251_v46, %v1255_v1  ;;  %v1259_v5 = vrot.slane %v1032_v55, %v4517_v11  ;;  %v1263_v7 = vrot.slane %v1032_v55, %v4520_v40  ;;  %v1034_v23 = vpop.xlane.xlu0 %1033 }
 0x287   :  { %v2090_v43 = vrot.slane %v2076_v3, %v4541_v25  ;;  %v2102_v8 = vrot.slane %v2092_v10, %v4541_v25  ;;  %v2109_v13 = vrot.slane %v2093_v39, %v4541_v25  ;;  %v2116_v18 = vrot.slane %v2094_v16, %v4541_v25 }
 0x288   :  { %v2123_v24 = vrot.slane %v2095_v4, %v4541_v25  ;;  %v1267_v48 = vrot.slane %v1032_v55, %v4523_v12  ;;  %v1271_v27 = vrot.slane %v1032_v55, %v4526_v14  ;;  %v1275_v53 = vrot.slane %v1032_v55, %v4529_v15  ;;  %v1036_v17 = vpop.xlane.xlu1 %1035 }
 0x289   :  { %v2091_v28 = vcombine.low %v2083_v50, %v2090_v43  ;;  %v2124_v30 = vcombine.low %v2102_v8, %v2109_v13  ;;  %v1279_v31 = vrot.slane %v1032_v55, %v4532_v19  ;;  %v1283_v29 = vrot.slane %v1032_v55, %v4535_v20 }
 0x28a   :  { %v2125_v34 = vcombine.low %v2116_v18, %v2123_v24  ;;  %v1287_v32 = vrot.slane %v1032_v55, %v4538_v21  ;;  %v2141_v35 = vcombine.low %v1259_v5, %v1263_v7  ;;  %v2142_v37 = vcombine.low %v1267_v48, %v1271_v27 }
 0x28b   :  { %3131 = vperm.xlu1 %3761, %v2091_v28   ;;  %v2132_v57 = vrot.slane %v2124_v30, %v4541_v25  ;;  %v2143_v38 = vcombine.low %v1275_v53, %v1279_v31  ;;  %v1291_v42 = vrot.slane %v1034_v23, %v4517_v11  ;;  %v1295_v61 = vrot.slane %v1034_v23, %v4520_v40 }
 0x28c   :  { %v2139_v36 = vrot.slane %v2125_v34, %v4541_v25  ;;  %v2144_v51 = vcombine.low %v1283_v29, %v1287_v32  ;;  %v2151_v9 = vrot.slane %v2141_v35, %v4541_v25  ;;  %v2158_v41 = vrot.slane %v2142_v37, %v4541_v25 }
 0x28d   :  { %v2165_v45 = vrot.slane %v2143_v38, %v4541_v25  ;;  %v1299_v33 = vrot.slane %v1034_v23, %v4523_v12  ;;  %v1303_v47 = vrot.slane %v1034_v23, %v4526_v14  ;;  %v1307_v0 = vrot.slane %v1034_v23, %v4529_v15 }
 0x28e   :  { %v2140_v49 = vcombine.low %v2132_v57, %v2139_v36  ;;  %v2172_v22 = vrot.slane %v2144_v51, %v4541_v25  ;;  %v2173_v58 = vcombine.low %v2151_v9, %v2158_v41  ;;  %v1311_v52 = vrot.slane %v1034_v23, %v4532_v19  ;;  %v1038_v5 = vpop.xlane.xlu0 %1037 }
 0x28f   :  { %v1315_v26 = vrot.slane %v1034_v23, %v4535_v20  ;;  %v1319_v54 = vrot.slane %v1034_v23, %v4538_v21  ;;  %v2190_v55 = vcombine.low %v1291_v42, %v1295_v61  ;;  %v2191_v56 = vcombine.low %v1299_v33, %v1303_v47 }
 0x290   :  { %3134 = vperm.xlu1 %3761, %v2140_v49   ;;  %v2174_v59 = vcombine.low %v2165_v45, %v2172_v22  ;;  %v2181_v60 = vrot.slane %v2173_v58, %v4541_v25  ;;  %v2192_v62 = vcombine.low %v1307_v0, %v1311_v52  ;;  %v1323_v63 = vrot.slane %v1036_v17, %v4517_v11  ;;  %v4635_v6 = vpop.xlane.xlu1 %1039 }
 0x291   :  { %v2193_v46 = vcombine.low %v1315_v26, %v1319_v54  ;;  %v2200_v1 = vrot.slane %v2190_v55, %v4541_v25  ;;  %v2207_v3 = vrot.slane %v2191_v56, %v4541_v25  ;;  %v1327_v10 = vrot.slane %v1036_v17, %v4520_v40 }
 0x292   :  { %v2188_v39 = vrot.slane %v2174_v59, %v4541_v25  ;;  %v2214_v16 = vrot.slane %v2192_v62, %v4541_v25  ;;  %v1331_v50 = vrot.slane %v1036_v17, %v4523_v12  ;;  %v1335_v4 = vrot.slane %v1036_v17, %v4526_v14 }
 0x293   :  { %v2221_v7 = vrot.slane %v2193_v46, %v4541_v25  ;;  %v2222_v43 = vcombine.low %v2200_v1, %v2207_v3  ;;  %v1339_v8 = vrot.slane %v1036_v17, %v4529_v15  ;;  %v1343_v13 = vrot.slane %v1036_v17, %v4532_v19 }
 0x294   :  { %v2189_v18 = vcombine.low %v2181_v60, %v2188_v39  ;;  %v1347_v23 = vrot.slane %v1036_v17, %v4535_v20  ;;  %v1351_v24 = vrot.slane %v1036_v17, %v4538_v21  ;;  %v2239_v48 = vcombine.low %v1323_v63, %v1327_v10 }
 0x295   :  { %v2223_v27 = vcombine.low %v2214_v16, %v2221_v7  ;;  %v2230_v53 = vrot.slane %v2222_v43, %v4541_v25  ;;  %v2240_v30 = vcombine.low %v1331_v50, %v1335_v4  ;;  %v2241_v31 = vcombine.low %v1339_v8, %v1343_v13 }
 0x296   :  { %v4650_v28 = vpop.xlane.xlu1 %1041  ;;  %3137 = vperm.xlu1 %3761, %v2189_v18   ;;  %v2242_v29 = vcombine.low %v1347_v23, %v1351_v24  ;;  %v2249_v34 = vrot.slane %v2239_v48, %v4541_v25  ;;  %v1355_v32 = vrot.slane %v1038_v5, %v4517_v11  ;;  %v1359_v35 = vrot.slane %v1038_v5, %v4520_v40 }
 0x297   :  { %v2237_v37 = vrot.slane %v2223_v27, %v4541_v25  ;;  %v2256_v57 = vrot.slane %v2240_v30, %v4541_v25  ;;  %v2263_v38 = vrot.slane %v2241_v31, %v4541_v25  ;;  %v1363_v42 = vrot.slane %v1038_v5, %v4523_v12 }
 0x298   :  { %v2270_v61 = vrot.slane %v2242_v29, %v4541_v25  ;;  %v1367_v36 = vrot.slane %v1038_v5, %v4526_v14  ;;  %v1371_v51 = vrot.slane %v1038_v5, %v4529_v15  ;;  %v1375_v9 = vrot.slane %v1038_v5, %v4532_v19 }
 0x299   :  { %v2238_v41 = vcombine.low %v2230_v53, %v2237_v37  ;;  %v2271_v17 = vcombine.low %v2249_v34, %v2256_v57  ;;  %v1379_v33 = vrot.slane %v1038_v5, %v4535_v20  ;;  %v1383_v47 = vrot.slane %v1038_v5, %v4538_v21 }
 0x29a   :  { %v4663_v45 = vpop.xlane.xlu1 %1043  ;;  %v2272_v0 = vcombine.low %v2263_v38, %v2270_v61  ;;  %v2288_v49 = vcombine.low %v1355_v32, %v1359_v35  ;;  %v2289_v22 = vcombine.low %v1363_v42, %v1367_v36  ;;  %v2290_v58 = vcombine.low %v1371_v51, %v1375_v9 }
 0x29b   :  { %3140 = vperm.xlu1 %3761, %v2238_v41   ;;  %v2279_v52 = vrot.slane %v2271_v17, %v4541_v25  ;;  %v2291_v26 = vcombine.low %v1379_v33, %v1383_v47  ;;  %v1387_v54 = vrot.slane %v4635_v6, %v4517_v11  ;;  %v1391_v55 = vrot.slane %v4635_v6, %v4520_v40 }
 0x29c   :  { %v2286_v56 = vrot.slane %v2272_v0, %v4541_v25  ;;  %v2298_v59 = vrot.slane %v2288_v49, %v4541_v25  ;;  %v2305_v60 = vrot.slane %v2289_v22, %v4541_v25  ;;  %v2312_v62 = vrot.slane %v2290_v58, %v4541_v25 }
 0x29d   :  { %v2319_v63 = vrot.slane %v2291_v26, %v4541_v25  ;;  %v1395_v1 = vrot.slane %v4635_v6, %v4523_v12  ;;  %v1399_v3 = vrot.slane %v4635_v6, %v4526_v14  ;;  %v1403_v10 = vrot.slane %v4635_v6, %v4529_v15 }
 0x29e   :  { %v4677_v46 = vpop.xlane.xlu1 %1045  ;;  %v2287_v39 = vcombine.low %v2279_v52, %v2286_v56  ;;  %v2320_v16 = vcombine.low %v2298_v59, %v2305_v60  ;;  %v1407_v50 = vrot.slane %v4635_v6, %v4532_v19  ;;  %v1411_v4 = vrot.slane %v4635_v6, %v4535_v20 }
 0x29f   :  { %v2321_v5 = vcombine.low %v2312_v62, %v2319_v63  ;;  %v1415_v7 = vrot.slane %v4635_v6, %v4538_v21  ;;  %v2337_v43 = vcombine.low %v1387_v54, %v1391_v55  ;;  %v2338_v8 = vcombine.low %v1395_v1, %v1399_v3 }
 0x2a0   :  { %3143 = vperm.xlu1 %3761, %v2287_v39   ;;  %v2328_v13 = vrot.slane %v2320_v16, %v4541_v25  ;;  %v2339_v18 = vcombine.low %v1403_v10, %v1407_v50  ;;  %v1419_v23 = vrot.slane %v4650_v28, %v4517_v11  ;;  %v1423_v24 = vrot.slane %v4650_v28, %v4520_v40 }
 0x2a1   :  { %v2335_v48 = vrot.slane %v2321_v5, %v4541_v25  ;;  %v2340_v27 = vcombine.low %v1411_v4, %v1415_v7  ;;  %v2347_v53 = vrot.slane %v2337_v43, %v4541_v25  ;;  %v2354_v30 = vrot.slane %v2338_v8, %v4541_v25 }
 0x2a2   :  { %v4699_v6 = vpop.xlane.xlu1 %1047  ;;  %v2361_v31 = vrot.slane %v2339_v18, %v4541_v25  ;;  %v1427_v29 = vrot.slane %v4650_v28, %v4523_v12  ;;  %v1431_v34 = vrot.slane %v4650_v28, %v4526_v14  ;;  %v1435_v32 = vrot.slane %v4650_v28, %v4529_v15 }
 0x2a3   :  { %v2336_v35 = vcombine.low %v2328_v13, %v2335_v48  ;;  %v2368_v37 = vrot.slane %v2340_v27, %v4541_v25  ;;  %v2369_v57 = vcombine.low %v2347_v53, %v2354_v30  ;;  %v1439_v38 = vrot.slane %v4650_v28, %v4532_v19 }
 0x2a4   :  { %v1443_v42 = vrot.slane %v4650_v28, %v4535_v20  ;;  %v1447_v61 = vrot.slane %v4650_v28, %v4538_v21  ;;  %v2386_v36 = vcombine.low %v1419_v23, %v1423_v24  ;;  %v2387_v51 = vcombine.low %v1427_v29, %v1431_v34 }
 0x2a5   :  { %3146 = vperm.xlu1 %3761, %v2336_v35   ;;  %v2370_v9 = vcombine.low %v2361_v31, %v2368_v37  ;;  %v2377_v41 = vrot.slane %v2369_v57, %v4541_v25  ;;  %v2388_v17 = vcombine.low %v1435_v32, %v1439_v38  ;;  %v1451_v33 = vrot.slane %v4663_v45, %v4517_v11 }
 0x2a6   :  { %v2389_v47 = vcombine.low %v1443_v42, %v1447_v61  ;;  %v2396_v0 = vrot.slane %v2386_v36, %v4541_v25  ;;  %v2403_v49 = vrot.slane %v2387_v51, %v4541_v25  ;;  %v4720_v22 = vpop.xlane.xlu1 %1049  ;;  %v1455_v28 = vrot.slane %v4663_v45, %v4520_v40 }
 0x2a7   :  { %v2384_v58 = vrot.slane %v2370_v9, %v4541_v25  ;;  %v2410_v52 = vrot.slane %v2388_v17, %v4541_v25  ;;  %v1459_v26 = vrot.slane %v4663_v45, %v4523_v12  ;;  %v1463_v54 = vrot.slane %v4663_v45, %v4526_v14 }
 0x2a8   :  { %v2417_v55 = vrot.slane %v2389_v47, %v4541_v25  ;;  %v2418_v56 = vcombine.low %v2396_v0, %v2403_v49  ;;  %v1467_v59 = vrot.slane %v4663_v45, %v4529_v15  ;;  %v1471_v60 = vrot.slane %v4663_v45, %v4532_v19 }
 0x2a9   :  { %v2385_v62 = vcombine.low %v2377_v41, %v2384_v58  ;;  %v1475_v63 = vrot.slane %v4663_v45, %v4535_v20  ;;  %v1479_v1 = vrot.slane %v4663_v45, %v4538_v21  ;;  %v2435_v3 = vcombine.low %v1451_v33, %v1455_v28 }
 0x2aa   :  { %v2419_v10 = vcombine.low %v2410_v52, %v2417_v55  ;;  %v2426_v39 = vrot.slane %v2418_v56, %v4541_v25  ;;  %v2436_v16 = vcombine.low %v1459_v26, %v1463_v54  ;;  %v2437_v50 = vcombine.low %v1467_v59, %v1471_v60  ;;  %v4748_v18 = vpop.xlane.xlu1 %1051 }
 0x2ab   :  { %3149 = vperm.xlu1 %3761, %v2385_v62   ;;  %v2438_v4 = vcombine.low %v1475_v63, %v1479_v1  ;;  %v2445_v5 = vrot.slane %v2435_v3, %v4541_v25  ;;  %v1483_v7 = vrot.slane %v4677_v46, %v4517_v11  ;;  %v1487_v43 = vrot.slane %v4677_v46, %v4520_v40 }
 0x2ac   :  { %v2433_v8 = vrot.slane %v2419_v10, %v4541_v25  ;;  %v2452_v45 = vrot.slane %v2436_v16, %v4541_v25  ;;  %v2459_v13 = vrot.slane %v2437_v50, %v4541_v25  ;;  %v1491_v23 = vrot.slane %v4677_v46, %v4523_v12 }
 0x2ad   :  { %v2466_v24 = vrot.slane %v2438_v4, %v4541_v25  ;;  %v1495_v48 = vrot.slane %v4677_v46, %v4526_v14  ;;  %v1499_v27 = vrot.slane %v4677_v46, %v4529_v15  ;;  %v1503_v53 = vrot.slane %v4677_v46, %v4532_v19 }
 0x2ae   :  { %v2434_v30 = vcombine.low %v2426_v39, %v2433_v8  ;;  %v2467_v31 = vcombine.low %v2445_v5, %v2452_v45  ;;  %v1507_v29 = vrot.slane %v4677_v46, %v4535_v20  ;;  %v1511_v34 = vrot.slane %v4677_v46, %v4538_v21  ;;  %v1054_v33 = vpop.xlane.xlu1 %1053 }
 0x2af   :  { %v2468_v32 = vcombine.low %v2459_v13, %v2466_v24  ;;  %v2484_v35 = vcombine.low %v1483_v7, %v1487_v43  ;;  %v2485_v37 = vcombine.low %v1491_v23, %v1495_v48  ;;  %v2486_v57 = vcombine.low %v1499_v27, %v1503_v53 }
 0x2b0   :  { %3152 = vperm.xlu1 %3761, %v2434_v30   ;;  %v2475_v38 = vrot.slane %v2467_v31, %v4541_v25  ;;  %v2487_v42 = vcombine.low %v1507_v29, %v1511_v34  ;;  %v1515_v61 = vrot.slane %v4699_v6, %v4517_v11  ;;  %v1519_v36 = vrot.slane %v4699_v6, %v4520_v40 }
 0x2b1   :  { %v2482_v51 = vrot.slane %v2468_v32, %v4541_v25  ;;  %v2494_v9 = vrot.slane %v2484_v35, %v4541_v25  ;;  %v2501_v46 = vrot.slane %v2485_v37, %v4541_v25  ;;  %v2508_v41 = vrot.slane %v2486_v57, %v4541_v25 }
 0x2b2   :  { %v2515_v17 = vrot.slane %v2487_v42, %v4541_v25  ;;  %v1523_v47 = vrot.slane %v4699_v6, %v4523_v12  ;;  %v1527_v0 = vrot.slane %v4699_v6, %v4526_v14  ;;  %v1531_v49 = vrot.slane %v4699_v6, %v4529_v15 }
 0x2b3   :  { %v2483_v28 = vcombine.low %v2475_v38, %v2482_v51  ;;  %v2516_v58 = vcombine.low %v2494_v9, %v2501_v46  ;;  %v1535_v52 = vrot.slane %v4699_v6, %v4532_v19  ;;  %v1539_v26 = vrot.slane %v4699_v6, %v4535_v20 }
 0x2b4   :  { %v2517_v54 = vcombine.low %v2508_v41, %v2515_v17  ;;  %v1543_v55 = vrot.slane %v4699_v6, %v4538_v21  ;;  %v2533_v56 = vcombine.low %v1515_v61, %v1519_v36  ;;  %v2534_v59 = vcombine.low %v1523_v47, %v1527_v0  ;;  %v1056_v6 = vpop.xlane.xlu0 %1055 }
 0x2b5   :  { %3155 = vperm.xlu1 %3761, %v2483_v28   ;;  %v2524_v60 = vrot.slane %v2516_v58, %v4541_v25  ;;  %v2535_v62 = vcombine.low %v1531_v49, %v1535_v52  ;;  %v1611_v63 = vrot.slane %v1054_v33, %v4517_v11  ;;  %v1615_v1 = vrot.slane %v1054_v33, %v4520_v40 }
 0x2b6   :  { %v2531_v3 = vrot.slane %v2517_v54, %v4541_v25  ;;  %v2536_v10 = vcombine.low %v1539_v26, %v1543_v55  ;;  %v2543_v39 = vrot.slane %v2533_v56, %v4541_v25  ;;  %v2550_v16 = vrot.slane %v2534_v59, %v4541_v25 }
 0x2b7   :  { %v2557_v50 = vrot.slane %v2535_v62, %v4541_v25  ;;  %v1619_v4 = vrot.slane %v1054_v33, %v4523_v12  ;;  %v1623_v5 = vrot.slane %v1054_v33, %v4526_v14  ;;  %v1627_v7 = vrot.slane %v1054_v33, %v4529_v15 }
 0x2b8   :  { %v2532_v43 = vcombine.low %v2524_v60, %v2531_v3  ;;  %v2564_v8 = vrot.slane %v2536_v10, %v4541_v25  ;;  %v2565_v45 = vcombine.low %v2543_v39, %v2550_v16  ;;  %v1631_v13 = vrot.slane %v1054_v33, %v4532_v19  ;;  %v1058_v39 = vpop.xlane.xlu0 %1057 }
 0x2b9   :  { %v1635_v23 = vrot.slane %v1054_v33, %v4535_v20  ;;  %v1639_v24 = vrot.slane %v1054_v33, %v4538_v21  ;;  %v2680_v48 = vcombine.low %v1611_v63, %v1615_v1  ;;  %v2681_v27 = vcombine.low %v1619_v4, %v1623_v5 }
 0x2ba   :  { %3158 = vperm.xlu1 %3761, %v2532_v43   ;;  %v2566_v53 = vcombine.low %v2557_v50, %v2564_v8  ;;  %v2573_v30 = vrot.slane %v2565_v45, %v4541_v25  ;;  %v2682_v31 = vcombine.low %v1627_v7, %v1631_v13  ;;  %v1643_v29 = vrot.slane %v1056_v6, %v4517_v11 }
 0x2bb   :  { %v2683_v34 = vcombine.low %v1635_v23, %v1639_v24  ;;  %v2690_v32 = vrot.slane %v2680_v48, %v4541_v25  ;;  %v2697_v35 = vrot.slane %v2681_v27, %v4541_v25  ;;  %v1647_v37 = vrot.slane %v1056_v6, %v4520_v40 }
 0x2bc   :  { %v2580_v57 = vrot.slane %v2566_v53, %v4541_v25  ;;  %v2704_v38 = vrot.slane %v2682_v31, %v4541_v25  ;;  %v1651_v42 = vrot.slane %v1056_v6, %v4523_v12  ;;  %v1655_v61 = vrot.slane %v1056_v6, %v4526_v14 }
 0x2bd   :  { %v2711_v36 = vrot.slane %v2683_v34, %v4541_v25  ;;  %v2712_v51 = vcombine.low %v2690_v32, %v2697_v35  ;;  %v1659_v9 = vrot.slane %v1056_v6, %v4529_v15  ;;  %v1663_v46 = vrot.slane %v1056_v6, %v4532_v19 }
 0x2be   :  { %v2581_v41 = vcombine.low %v2573_v30, %v2580_v57  ;;  %v1667_v17 = vrot.slane %v1056_v6, %v4535_v20  ;;  %v1671_v33 = vrot.slane %v1056_v6, %v4538_v21  ;;  %v2729_v47 = vcombine.low %v1643_v29, %v1647_v37 }
 0x2bf   :  { %v2713_v0 = vcombine.low %v2704_v38, %v2711_v36  ;;  %v2720_v49 = vrot.slane %v2712_v51, %v4541_v25  ;;  %v2730_v28 = vcombine.low %v1651_v42, %v1655_v61  ;;  %v2731_v58 = vcombine.low %v1659_v9, %v1663_v46  ;;  %v1060_v38 = vpop.xlane.xlu0 %1059 }
 0x2c0   :  { %3161 = vperm.xlu1 %3761, %v2581_v41   ;;  %v2732_v52 = vcombine.low %v1667_v17, %v1671_v33  ;;  %v2739_v26 = vrot.slane %v2729_v47, %v4541_v25  ;;  %v1547_v54 = vrot.slane %v4720_v22, %v4517_v11  ;;  %v1551_v55 = vrot.slane %v4720_v22, %v4520_v40 }
 0x2c1   :  { %v2727_v56 = vrot.slane %v2713_v0, %v4541_v25  ;;  %v2746_v59 = vrot.slane %v2730_v28, %v4541_v25  ;;  %v2753_v60 = vrot.slane %v2731_v58, %v4541_v25  ;;  %v1555_v62 = vrot.slane %v4720_v22, %v4523_v12 }
 0x2c2   :  { %v2760_v63 = vrot.slane %v2732_v52, %v4541_v25  ;;  %v1559_v1 = vrot.slane %v4720_v22, %v4526_v14  ;;  %v1563_v3 = vrot.slane %v4720_v22, %v4529_v15  ;;  %v1567_v10 = vrot.slane %v4720_v22, %v4532_v19 }
 0x2c3   :  { %v2728_v16 = vcombine.low %v2720_v49, %v2727_v56  ;;  %v2761_v50 = vcombine.low %v2739_v26, %v2746_v59  ;;  %v1571_v6 = vrot.slane %v4720_v22, %v4535_v20  ;;  %v1575_v4 = vrot.slane %v4720_v22, %v4538_v21 }
 0x2c4   :  { %v2762_v5 = vcombine.low %v2753_v60, %v2760_v63  ;;  %v2582_v7 = vcombine.low %v1547_v54, %v1551_v55  ;;  %v2583_v43 = vcombine.low %v1555_v62, %v1559_v1  ;;  %v2584_v8 = vcombine.low %v1563_v3, %v1567_v10  ;;  %v1062_v1 = vpop.xlane.xlu0 %1061 }
 0x2c5   :  { %3170 = vperm.xlu1 %3761, %v2728_v16   ;;  %v2769_v45 = vrot.slane %v2761_v50, %v4541_v25  ;;  %v2585_v13 = vcombine.low %v1571_v6, %v1575_v4  ;;  %v1579_v23 = vrot.slane %v4748_v18, %v4517_v11  ;;  %v1583_v24 = vrot.slane %v4748_v18, %v4520_v40 }
 0x2c6   :  { %v2776_v48 = vrot.slane %v2762_v5, %v4541_v25  ;;  %v2592_v27 = vrot.slane %v2582_v7, %v4541_v25  ;;  %v2599_v22 = vrot.slane %v2583_v43, %v4541_v25  ;;  %v2606_v53 = vrot.slane %v2584_v8, %v4541_v25 }
 0x2c7   :  { %v2613_v30 = vrot.slane %v2585_v13, %v4541_v25  ;;  %v1587_v31 = vrot.slane %v4748_v18, %v4523_v12  ;;  %v1591_v29 = vrot.slane %v4748_v18, %v4526_v14  ;;  %v1595_v34 = vrot.slane %v4748_v18, %v4529_v15 }
 0x2c8   :  { %v2777_v32 = vcombine.low %v2769_v45, %v2776_v48  ;;  %v2614_v35 = vcombine.low %v2592_v27, %v2599_v22  ;;  %v1599_v37 = vrot.slane %v4748_v18, %v4532_v19  ;;  %v1603_v57 = vrot.slane %v4748_v18, %v4535_v20 }
 0x2c9   :  { %v2615_v42 = vcombine.low %v2606_v53, %v2613_v30  ;;  %v1607_v61 = vrot.slane %v4748_v18, %v4538_v21  ;;  %v2631_v36 = vcombine.low %v1579_v23, %v1583_v24  ;;  %v2632_v51 = vcombine.low %v1587_v31, %v1591_v29 }
 0x2ca   :  { %3173 = vperm.xlu0 %3762, %v2777_v32   ;;  %v2622_v9 = vrot.slane %v2614_v35, %v4541_v25  ;;  %v2633_v46 = vcombine.low %v1595_v34, %v1599_v37  ;;  %v1675_v41 = vrot.slane %v1058_v39, %v4517_v11  ;;  %v1679_v17 = vrot.slane %v1058_v39, %v4520_v40  ;;  %v1064_v35 = vpop.xlane.xlu0 %1063 }
 0x2cb   :  { %v2629_v33 = vrot.slane %v2615_v42, %v4541_v25  ;;  %v2634_v47 = vcombine.low %v1603_v57, %v1607_v61  ;;  %v2641_v0 = vrot.slane %v2631_v36, %v4541_v25  ;;  %v2648_v49 = vrot.slane %v2632_v51, %v4541_v25 }
 0x2cc   :  { %v2655_v28 = vrot.slane %v2633_v46, %v4541_v25  ;;  %v1683_v18 = vrot.slane %v1058_v39, %v4523_v12  ;;  %v1687_v58 = vrot.slane %v1058_v39, %v4526_v14  ;;  %v1691_v52 = vrot.slane %v1058_v39, %v4529_v15 }
 0x2cd   :  { %v2630_v26 = vcombine.low %v2622_v9, %v2629_v33  ;;  %v2662_v54 = vrot.slane %v2634_v47, %v4541_v25  ;;  %v2663_v55 = vcombine.low %v2641_v0, %v2648_v49  ;;  %v1695_v56 = vrot.slane %v1058_v39, %v4532_v19 }
 0x2ce   :  { %v1699_v59 = vrot.slane %v1058_v39, %v4535_v20  ;;  %v1703_v60 = vrot.slane %v1058_v39, %v4538_v21  ;;  %v2778_v62 = vcombine.low %v1675_v41, %v1679_v17  ;;  %v2779_v63 = vcombine.low %v1683_v18, %v1687_v58 }
 0x2cf   :  { %3164 = vperm.xlu1 %3761, %v2630_v26   ;;  %v2664_v3 = vcombine.low %v2655_v28, %v2662_v54  ;;  %v2671_v10 = vrot.slane %v2663_v55, %v4541_v25  ;;  %v2780_v16 = vcombine.low %v1691_v52, %v1695_v56  ;;  %v1707_v50 = vrot.slane %v1060_v38, %v4517_v11 }
 0x2d0   :  { %v2781_v6 = vcombine.low %v1699_v59, %v1703_v60  ;;  %v2788_v4 = vrot.slane %v2778_v62, %v4541_v25  ;;  %v2795_v5 = vrot.slane %v2779_v63, %v4541_v25  ;;  %v1711_v7 = vrot.slane %v1060_v38, %v4520_v40  ;;  %v1066_v60 = vpop.xlane.xlu0 %1065 }
 0x2d1   :  { %v2678_v43 = vrot.slane %v2664_v3, %v4541_v25  ;;  %v2802_v39 = vrot.slane %v2780_v16, %v4541_v25  ;;  %v1715_v8 = vrot.slane %v1060_v38, %v4523_v12  ;;  %v1719_v45 = vrot.slane %v1060_v38, %v4526_v14 }
 0x2d2   :  { %v2809_v13 = vrot.slane %v2781_v6, %v4541_v25  ;;  %v2810_v23 = vcombine.low %v2788_v4, %v2795_v5  ;;  %v1723_v24 = vrot.slane %v1060_v38, %v4529_v15  ;;  %v1727_v48 = vrot.slane %v1060_v38, %v4532_v19 }
 0x2d3   :  { %v2679_v27 = vcombine.low %v2671_v10, %v2678_v43  ;;  %v1731_v22 = vrot.slane %v1060_v38, %v4535_v20  ;;  %v1735_v53 = vrot.slane %v1060_v38, %v4538_v21  ;;  %v2827_v30 = vcombine.low %v1707_v50, %v1711_v7 }
 0x2d4   :  { %v2811_v31 = vcombine.low %v2802_v39, %v2809_v13  ;;  %v2818_v29 = vrot.slane %v2810_v23, %v4541_v25  ;;  %v2828_v34 = vcombine.low %v1715_v8, %v1719_v45  ;;  %v2829_v32 = vcombine.low %v1723_v24, %v1727_v48 }
 0x2d5   :  { %3167 = vperm.xlu1 %3761, %v2679_v27   ;;  %v2830_v37 = vcombine.low %v1731_v22, %v1735_v53  ;;  %v2837_v57 = vrot.slane %v2827_v30, %v4541_v25  ;;  %v1739_v42 = vrot.slane %v1062_v1, %v4517_v11  ;;  %v1743_v61 = vrot.slane %v1062_v1, %v4520_v40 }
 0x2d6   :  { %v2825_v36 = vrot.slane %v2811_v31, %v4541_v25  ;;  %v2844_v51 = vrot.slane %v2828_v34, %v4541_v25  ;;  %v2851_v38 = vrot.slane %v2829_v32, %v4541_v25  ;;  %v1747_v9 = vrot.slane %v1062_v1, %v4523_v12 }
 0x2d7   :  { %v2858_v46 = vrot.slane %v2830_v37, %v4541_v25  ;;  %v1751_v41 = vrot.slane %v1062_v1, %v4526_v14  ;;  %v1755_v17 = vrot.slane %v1062_v1, %v4529_v15  ;;  %v1759_v33 = vrot.slane %v1062_v1, %v4532_v19 }
 0x2d8   :  { %v2826_v47 = vcombine.low %v2818_v29, %v2825_v36  ;;  %v2859_v0 = vcombine.low %v2837_v57, %v2844_v51  ;;  %v1763_v49 = vrot.slane %v1062_v1, %v4535_v20  ;;  %v1767_v28 = vrot.slane %v1062_v1, %v4538_v21  ;;  %v1068_v29 = vpop.xlane.xlu0 %1067 }
 0x2d9   :  { %v2860_v18 = vcombine.low %v2851_v38, %v2858_v46  ;;  %v2876_v58 = vcombine.low %v1739_v42, %v1743_v61  ;;  %v2877_v52 = vcombine.low %v1747_v9, %v1751_v41  ;;  %v2878_v26 = vcombine.low %v1755_v17, %v1759_v33 }
 0x2da   :  { %3176 = vperm.xlu0 %3762, %v2826_v47   ;;  %v2867_v54 = vrot.slane %v2859_v0, %v4541_v25  ;;  %v2879_v55 = vcombine.low %v1763_v49, %v1767_v28  ;;  %v1771_v56 = vrot.slane %v1064_v35, %v4517_v11  ;;  %v1775_v59 = vrot.slane %v1064_v35, %v4520_v40 }
 0x2db   :  { %v2874_v62 = vrot.slane %v2860_v18, %v4541_v25  ;;  %v2886_v63 = vrot.slane %v2876_v58, %v4541_v25  ;;  %v2893_v3 = vrot.slane %v2877_v52, %v4541_v25  ;;  %v2900_v1 = vrot.slane %v2878_v26, %v4541_v25 }
 0x2dc   :  { %v2907_v10 = vrot.slane %v2879_v55, %v4541_v25  ;;  %v1779_v16 = vrot.slane %v1064_v35, %v4523_v12  ;;  %v1783_v50 = vrot.slane %v1064_v35, %v4526_v14  ;;  %v1787_v6 = vrot.slane %v1064_v35, %v4529_v15  ;;  %v1070_v55 = vpop.xlane.xlu0 %1069 }
 0x2dd   :  { %v2875_v4 = vcombine.low %v2867_v54, %v2874_v62  ;;  %v2908_v5 = vcombine.low %v2886_v63, %v2893_v3  ;;  %v1791_v7 = vrot.slane %v1064_v35, %v4532_v19  ;;  %v1795_v43 = vrot.slane %v1064_v35, %v4535_v20 }
 0x2de   :  { %v2909_v39 = vcombine.low %v2900_v1, %v2907_v10  ;;  %v1799_v8 = vrot.slane %v1064_v35, %v4538_v21  ;;  %v2925_v45 = vcombine.low %v1771_v56, %v1775_v59  ;;  %v2926_v13 = vcombine.low %v1779_v16, %v1783_v50 }
 0x2df   :  { %3179 = vperm.xlu0 %3762, %v2875_v4   ;;  %v2916_v23 = vrot.slane %v2908_v5, %v4541_v25  ;;  %v2927_v24 = vcombine.low %v1787_v6, %v1791_v7  ;;  %v1803_v48 = vrot.slane %v1066_v60, %v4517_v11  ;;  %v1807_v27 = vrot.slane %v1066_v60, %v4520_v40 }
 0x2e0   :  { %v2923_v22 = vrot.slane %v2909_v39, %v4541_v25  ;;  %v2928_v53 = vcombine.low %v1795_v43, %v1799_v8  ;;  %v2935_v30 = vrot.slane %v2925_v45, %v4541_v25  ;;  %v2942_v31 = vrot.slane %v2926_v13, %v4541_v25 }
 0x2e1   :  { %v2949_v34 = vrot.slane %v2927_v24, %v4541_v25  ;;  %v1811_v32 = vrot.slane %v1066_v60, %v4523_v12  ;;  %v1815_v35 = vrot.slane %v1066_v60, %v4526_v14  ;;  %v1819_v37 = vrot.slane %v1066_v60, %v4529_v15 }
 0x2e2   :  { %v2924_v57 = vcombine.low %v2916_v23, %v2923_v22  ;;  %v2956_v42 = vrot.slane %v2928_v53, %v4541_v25  ;;  %v2957_v61 = vcombine.low %v2935_v30, %v2942_v31  ;;  %v1823_v36 = vrot.slane %v1066_v60, %v4532_v19 }
 0x2e3   :  { %v1827_v51 = vrot.slane %v1066_v60, %v4535_v20  ;;  %v1831_v38 = vrot.slane %v1066_v60, %v4538_v21  ;;  %v2974_v9 = vcombine.low %v1803_v48, %v1807_v27  ;;  %v2975_v46 = vcombine.low %v1811_v32, %v1815_v35 }
 0x2e4   :  { %3182 = vperm.xlu0 %3762, %v2924_v57   ;;  %v2958_v41 = vcombine.low %v2949_v34, %v2956_v42  ;;  %v2965_v17 = vrot.slane %v2957_v61, %v4541_v25  ;;  %v2976_v33 = vcombine.low %v1819_v37, %v1823_v36  ;;  %v1835_v47 = vrot.slane %v1068_v29, %v4517_v11 }
 0x2e5   :  { %v2977_v0 = vcombine.low %v1827_v51, %v1831_v38  ;;  %v2984_v49 = vrot.slane %v2974_v9, %v4541_v25  ;;  %v2991_v28 = vrot.slane %v2975_v46, %v4541_v25  ;;  %v1839_v18 = vrot.slane %v1068_v29, %v4520_v40 }
 0x2e6   :  { %v2972_v58 = vrot.slane %v2958_v41, %v4541_v25  ;;  %v2998_v52 = vrot.slane %v2976_v33, %v4541_v25  ;;  %v1843_v26 = vrot.slane %v1068_v29, %v4523_v12  ;;  %v1847_v54 = vrot.slane %v1068_v29, %v4526_v14 }
 0x2e7   :  { %v3005_v56 = vrot.slane %v2977_v0, %v4541_v25  ;;  %v3006_v59 = vcombine.low %v2984_v49, %v2991_v28  ;;  %v1851_v60 = vrot.slane %v1068_v29, %v4529_v15  ;;  %v1855_v62 = vrot.slane %v1068_v29, %v4532_v19 }
 0x2e8   :  { %v2973_v63 = vcombine.low %v2965_v17, %v2972_v58  ;;  %v1859_v3 = vrot.slane %v1068_v29, %v4535_v20  ;;  %v1863_v1 = vrot.slane %v1068_v29, %v4538_v21  ;;  %v3023_v10 = vcombine.low %v1835_v47, %v1839_v18 }
 0x2e9   :  { %v3007_v16 = vcombine.low %v2998_v52, %v3005_v56  ;;  %v3014_v50 = vrot.slane %v3006_v59, %v4541_v25  ;;  %v3024_v6 = vcombine.low %v1843_v26, %v1847_v54  ;;  %v3025_v4 = vcombine.low %v1851_v60, %v1855_v62 }
 0x2ea   :  { %3185 = vperm.xlu0 %3762, %v2973_v63   ;;  %v3026_v5 = vcombine.low %v1859_v3, %v1863_v1  ;;  %v3033_v7 = vrot.slane %v3023_v10, %v4541_v25  ;;  %v1867_v43 = vrot.slane %v1070_v55, %v4517_v11  ;;  %v1871_v39 = vrot.slane %v1070_v55, %v4520_v40 }
 0x2eb   :  { %v3021_v8 = vrot.slane %v3007_v16, %v4541_v25  ;;  %v3040_v45 = vrot.slane %v3024_v6, %v4541_v25  ;;  %v3047_v13 = vrot.slane %v3025_v4, %v4541_v25  ;;  %v1875_v23 = vrot.slane %v1070_v55, %v4523_v12 }
 0x2ec   :  { %v3054_v24 = vrot.slane %v3026_v5, %v4541_v25  ;;  %v1879_v48 = vrot.slane %v1070_v55, %v4526_v14  ;;  %v1883_v27 = vrot.slane %v1070_v55, %v4529_v15  ;;  %v1887_v22 = vrot.slane %v1070_v55, %v4532_v19 }
 0x2ed   :  { %v3022_v53 = vcombine.low %v3014_v50, %v3021_v8  ;;  %v3055_v11 = vcombine.low %v3033_v7, %v3040_v45  ;;  %v1891_v40 = vrot.slane %v1070_v55, %v4535_v20  ;;  %v1895_v30 = vrot.slane %v1070_v55, %v4538_v21 }
 0x2ee   :  { %v3056_v31 = vcombine.low %v3047_v13, %v3054_v24  ;;  %v3072_v29 = vcombine.low %v1867_v43, %v1871_v39  ;;  %v3073_v34 = vcombine.low %v1875_v23, %v1879_v48  ;;  %v3074_v32 = vcombine.low %v1883_v27, %v1887_v22 }
 0x2ef   :  { %3188 = vperm.xlu0 %3762, %v3022_v53   ;;  %v3063_v12 = vrot.slane %v3055_v11, %v4541_v25  ;;  %v3075_v35 = vcombine.low %v1891_v40, %v1895_v30  ;;  %v3197_v56 = vand.u32 127, %v1096_v2 }
 0x2f0   :  { %v3070_v14 = vrot.slane %v3056_v31, %v4541_v25  ;;  %v3082_v15 = vrot.slane %v3072_v29, %v4541_v25  ;;  %v3089_v19 = vrot.slane %v3073_v34, %v4541_v25  ;;  %v3096_v37 = vrot.slane %v3074_v32, %v4541_v25 }
 0x2f1   :  { %v3103_v20 = vrot.slane %v3075_v35, %v4541_v25  ;;  %v3202_v59 = vadd.s32 4294967288, %v3197_v56  ;;  %v3209_v60 = vadd.s32 4294967280, %v3197_v56  ;;  %v3216_v62 = vadd.s32 4294967272, %v3197_v56 }
 0x2f2   :  { %v3071_v57 = vcombine.low %v3063_v12, %v3070_v14  ;;  %v3104_v21 = vcombine.low %v3082_v15, %v3089_v19  ;;  %v3223_v63 = vadd.s32 4294967264, %v3197_v56  ;;  %v3230_v1 = vadd.s32 4294967256, %v3197_v56 }
 0x2f3   :  { %v3105_v42 = vcombine.low %v3096_v37, %v3103_v20  ;;  %v3237_v10 = vadd.s32 4294967248, %v3197_v56  ;;  %v4997_v50 = vsub.s32 %v3197_v56, %v4514_v44  ;;  %v5000_v6 = vsub.s32 %v3202_v59, %v4514_v44 }
 0x2f4   :  { %3191 = vperm.xlu0 %3762, %v3071_v57   ;;  %v3112_v61 = vrot.slane %v3104_v21, %v4541_v25  ;;  %v3244_v4 = vadd.s32 4294967240, %v3197_v56  ;;  %v5003_v5 = vsub.s32 %v3209_v60, %v4514_v44  ;;  %v5006_v7 = vsub.s32 %v3216_v62, %v4514_v44 }
 0x2f5   :  { %v3119_v36 = vrot.slane %v3105_v42, %v4541_v25  ;;  %v5009_v43 = vsub.s32 %v3223_v63, %v4514_v44  ;;  %v3251_v39 = vadd.s32 4294967232, %v3197_v56  ;;  %v5012_v8 = vsub.s32 %v3230_v1, %v4514_v44 }
 0x2f6   :  { %v5015_v45 = vsub.s32 %v3237_v10, %v4514_v44  ;;  %v3258_v13 = vadd.s32 4294967224, %v3197_v56  ;;  %v5019_v48 = vsub.s32 %v3244_v4, %v4514_v44  ;;  %v3265_v27 = vadd.s32 4294967216, %v3197_v56 }
 0x2f7   :  { %v3120_v51 = vcombine.low %v3112_v61, %v3119_v36  ;;  %v3272_v11 = vadd.s32 4294967208, %v3197_v56  ;;  %v3279_v40 = vadd.s32 4294967200, %v3197_v56  ;;  %v5029_v29 = vsub.s32 %v3251_v39, %v4514_v44 }
 0x2f8   :  { %v3261_v32 = vsub.s32 %v3258_v13, %v4514_v44  ;;  %v3286_v12 = vadd.s32 4294967192, %v3197_v56  ;;  %v3268_v15 = vsub.s32 %v3265_v27, %v4514_v44  ;;  %v3293_v19 = vadd.s32 4294967184, %v3197_v56 }
 0x2f9   :  { %3194 = vperm.xlu0 %3762, %v3120_v51   ;;  %v3275_v57 = vsub.s32 %v3272_v11, %v4514_v44  ;;  %v3282_v21 = vsub.s32 %v3279_v40, %v4514_v44 }
 0x2fa   :  { %v3123_v38 = vpop.permute.xlu1 %3122  ;;  %v3296_v59 = vsub.s32 %v3293_v19, %v4514_v44 }
 0x2fb   :  { %v3201_v30 = vrot.slane %v3123_v38, %v4997_v50  ;;  %v3300_v38 = vadd.s32 4294967176, %v3197_v56 }
 0x300   :  { %v3126_v28 = vpop.permute.xlu0 %3125 }
 0x301   :  { %v3206_v24 = vrot.slane %v3126_v28, %v5000_v6 }
 0x303   :  { %v3208_v35 = vsel %vm3207_vm1, %v3206_v24, %v3201_v30 }
 0x305   :  { %v4963_v9 = vpop.permute.xlu1 %3128 }
 0x306   :  { %v3213_v53 = vrot.slane %v4963_v9, %v5003_v5 }
 0x308   :  { %v3215_v37 = vsel %vm3214_vm2, %v3213_v53, %v3208_v35 }
 0x30a   :  { %v4965_v46 = vpop.permute.xlu1 %3131 }
 0x30b   :  { %v3220_v31 = vrot.slane %v4965_v46, %v5006_v7 }
 0x30d   :  { %v3222_v36 = vsel %vm3221_vm3, %v3220_v31, %v3215_v37 }
 0x30f   :  { %v4967_v41 = vpop.permute.xlu1 %3134 }
 0x310   :  { %v3227_v34 = vrot.slane %v4967_v41, %v5009_v43  ;;  %v3289_v41 = vsub.s32 %v3286_v12, %v4514_v44 }
 0x312   :  { %v3229_v9 = vsel %vm3228_vm4, %v3227_v34, %v3222_v36 }
 0x315   :  { %v4969_v17 = vpop.permute.xlu1 %3137 }
 0x316   :  { %v3234_v14 = vrot.slane %v4969_v17, %v5012_v8 }
 0x31a   :  { %v4971_v33 = vpop.permute.xlu1 %3140 }
 0x31b   :  { %v3241_v20 = vrot.slane %v4971_v33, %v5015_v45  ;;  %v3236_v33 = vsel %vm3235_vm5, %v3234_v14, %v3229_v9 }
 0x31d   :  { %v3243_v56 = vsel %vm3242_vm6, %v3241_v20, %v3236_v33 }
 0x31f   :  { %v4973_v47 = vpop.permute.xlu1 %3143 }
 0x320   :  { %v3248_v51 = vrot.slane %v4973_v47, %v5019_v48 }
 0x324   :  { %v4975_v0 = vpop.permute.xlu1 %3146 }
 0x325   :  { %v3255_v46 = vrot.slane %v4975_v0, %v5029_v29 }
 0x32a   :  { %v4977_v49 = vpop.permute.xlu1 %3149 }
 0x32b   :  { %v3262_v28 = vrot.slane %v4977_v49, %v3261_v32  ;;  %v3303_v49 = vsub.s32 %v3300_v38, %v4514_v44 }
 0x32f   :  { %v4979_v18 = vpop.permute.xlu1 %3152 }
 0x330   :  { %v3269_v60 = vrot.slane %v4979_v18, %v3268_v15 }
 0x334   :  { %v4983_v52 = vpop.permute.xlu1 %3155 }
 0x335   :  { %v3276_v63 = vrot.slane %v4983_v52, %v3275_v57 }
 0x339   :  { %v4987_v54 = vpop.permute.xlu1 %3158 }
 0x33f   :  { %v4994_v16 = vpop.permute.xlu1 %3161 }
 0x340   :  { %v3290_v52 = vrot.slane %v4994_v16, %v3289_v41 }
 0x344   :  { %v3171_v23 = vpop.permute.xlu1 %3170 }
 0x345   :  { %v3310_v0 = vrot.slane %v3171_v23, %v4997_v50 }
 0x349   :  { %v4981_v58 = vpop.permute.xlu0 %3173 }
 0x34a   :  { %v3314_v17 = vrot.slane %v4981_v58, %v5000_v6  ;;  %v3250_v58 = vsel %vm3249_vm7, %v3248_v51, %v3243_v56  ;;  %v3283_v6 = vrot.slane %v4987_v54, %v3282_v21 }
 0x34c   :  { %v3315_v18 = vsel %vm3207_vm1, %v3314_v17, %v3310_v0 }
 0x34e   :  { %v3165_v42 = vpop.permute.xlu1 %3164 }
 0x354   :  { %v3168_v50 = vpop.permute.xlu1 %3167 }
 0x355   :  { %v3304_v13 = vrot.slane %v3168_v50, %v3303_v49 }
 0x359   :  { %v4985_v26 = vpop.permute.xlu0 %3176 }
 0x35a   :  { %v3319_v47 = vrot.slane %v4985_v26, %v5003_v5  ;;  %v3257_v26 = vsel %vm3256_vm8, %v3255_v46, %v3250_v58 }
 0x35b   :  { %v3264_v4 = vsel %vm3263_vm9, %v3262_v28, %v3257_v26 }
 0x35c   :  { %v3320_v44 = vsel %vm3214_vm2, %v3319_v47, %v3315_v18 }
 0x35e   :  { %v4989_v55 = vpop.permute.xlu0 %3179 }
 0x35f   :  { %v3324_v62 = vrot.slane %v4989_v55, %v5006_v7  ;;  %v3297_v7 = vrot.slane %v3165_v42, %v3296_v59 }
 0x363   :  { %v4992_v3 = vpop.permute.xlu0 %3182 }
 0x364   :  { %v3329_v1 = vrot.slane %v4992_v3, %v5009_v43  ;;  %v3271_v3 = vsel %vm3270_vm10, %v3269_v60, %v3264_v4  ;;  %v3325_v43 = vsel %vm3221_vm3, %v3324_v62, %v3320_v44 }
 0x365   :  { %v3278_v39 = vsel %vm3277_vm11, %v3276_v63, %v3271_v3 }
 0x366   :  { %v3285_v23 = vsel %vm3284_vm12, %v3283_v6, %v3278_v39 }
 0x369   :  { %v5021_v22 = vpop.permute.xlu0 %3185 }
 0x36a   :  { %v3334_v55 = vrot.slane %v5021_v22, %v5012_v8  ;;  %v3330_v8 = vsel %vm3228_vm4, %v3329_v1, %v3325_v43 }
 0x36c   :  { %v3335_v16 = vsel %vm3235_vm5, %v3334_v55, %v3330_v8 }
 0x36e   :  { %v3189_v61 = vpop.permute.xlu0 %3188 }
 0x36f   :  { %v3339_v5 = vrot.slane %v3189_v61, %v5015_v45  ;;  %v3292_v45 = vsel %vm3291_vm13, %v3290_v52, %v3285_v23 }
 0x370   :  { %v3299_v53 = vsel %vm3298_vm14, %v3297_v7, %v3292_v45 }
 0x371   :  { %v3340_v27 = vsel %vm3242_vm6, %v3339_v5, %v3335_v16  ;;  %v3306_v11 = vsel %vm3305_vm15, %v3304_v13, %v3299_v53 }
 0x373   :  { %v3192_v10 = vpop.permute.xlu0 %3191 }
 0x374   :  { %v3344_v54 = vrot.slane %v3192_v10, %v5019_v48 }
 0x376   :  { %v3345_v48 = vsel %vm3249_vm7, %v3344_v54, %v3340_v27 }
 0x378   :  { %v3195_v24 = vpop.permute.xlu0 %3194 }
 0x379   :  { %v3349_v22 = vrot.slane %v3195_v24, %v5029_v29 }
 0x37b   :  { %v3350_v40 = vsel %vm3256_vm8, %v3349_v22, %v3345_v48 }
 0x37c   :  { %v3351_v30 = vcombine.low %v3306_v11, %v3350_v40 }
 0x37e   :  { %v3358_v31 = vrot.slane %v3351_v30, %v4541_v25 }
 0x380   :  { %v3365_v34 = vrot.slane %v3358_v31, %v4541_v25 }
 0x382   :  { %3371 = vst.msk [vmem:[#allocation2] sm:$0x3] %vm3369_vm0, %v3365_v34 }
 0x383   :  { %3974 = shalt.err (!%p3971_p4)
}
 0x384   :  { %s3975_s12 = scalar_lea.hbm %s5108_s5, 32 }
 0x385   :  { %p3976_p5 = scmp.ne.s32.totalorder %s5108_s5, %s3975_s12  ;;  %p3979_p6 = scmp.lt.u32.totalorder %s3975_s12, %s5108_s5 }
 0x387   :  { %p3981_p7 = pnand %p3979_p6, %p3976_p5 }
 0x389   :  { %3984 = shalt.err (!%p3981_p7)
}
 0x38a   :  { %3381 = dma.vmem_to_hbm [thread:$0]  %s3379_s3, 32, %s5108_s5, [#allocation3]  }
 0x38b   :  { %3985 = dma.done.wait [#allocation3], 32  }
 0x38c   :  { %3986 = vsyncadd [#allocation3], 4294967264 }
 0x38d   :  { %3385 = vsyncpa [#allocation3], 1 }

</bundles_post_ra>
